<compile_context>
chip_gen: v5e
topology: v5e:2x2
jax: 0.10.0
libtpu: 0.0.40
codegen_flags: <defaults>
</compile_context>

<pallas_src>
from functools import partial

import jax
import jax.numpy as jnp
from jax.experimental import pallas as pl
from jax.experimental.pallas import tpu as pltpu


BLOCK_ROWS = 512                      # row tile for the row-parallel kernels (was 128)
_VMEM_LIMIT = 64 * 1024 * 1024        # safe on v7x; can go to 96-128 MiB on v5e/v6e


def _row_params():
    return pltpu.CompilerParams(
        dimension_semantics=("parallel",),
        vmem_limit_bytes=_VMEM_LIMIT,
    )


def _row_grid(n, block_rows=BLOCK_ROWS):
    """Row tiling without pad/slice HBM passes: a single full block when small, otherwise a
    cdiv grid (Pallas masks the ragged last block; all kernels here are purely row-wise)."""
    blk = min(block_rows, n)
    return blk, (pl.cdiv(n, blk),)


# ---------------------------------------------------------------------------
# Row-tiled projection / FF / gating kernels
# ---------------------------------------------------------------------------

def _matmul_kernel(x_ref, w_ref, o_ref):
    o_ref[...] = jnp.dot(x_ref[...].astype(jnp.bfloat16), w_ref[...],
                         preferred_element_type=jnp.float32).astype(o_ref.dtype)


def matmul_rows(x, w, out_dtype=jnp.bfloat16, block_rows=BLOCK_ROWS):
    """x: (N, K) @ w: (K, M) bf16 -> (N, M), bias-free, row tiled, bf16 output."""
    N, K = x.shape
    Mo = w.shape[1]
    blk, grid = _row_grid(N, block_rows)
    return pl.pallas_call(
        _matmul_kernel,
        out_shape=jax.ShapeDtypeStruct((N, Mo), out_dtype),
        grid=grid,
        in_specs=[
            pl.BlockSpec((blk, K), lambda i: (i, 0)),
            pl.BlockSpec((K, Mo), lambda i: (0, 0)),
        ],
        out_specs=pl.BlockSpec((blk, Mo), lambda i: (i, 0)),
        compiler_params=_row_params(),
    )(x, w)


def _layernorm(x, g, b):
    mu = jnp.mean(x, axis=-1, keepdims=True)
    xc = x - mu
    var = jnp.mean(xc * xc, axis=-1, keepdims=True)
    return xc * jax.lax.rsqrt(var + 1e-5) * g + b


def _ln_matmul_kernel(x_ref, g_ref, b_ref, w_ref, o_ref):
    y = _layernorm(x_ref[...], g_ref[...], b_ref[...])
    o_ref[...] = jnp.dot(y.astype(jnp.bfloat16), w_ref[...],
                         preferred_element_type=jnp.float32).astype(o_ref.dtype)


def ln_matmul(x, g, b, w, block_rows=BLOCK_ROWS):
    """LayerNorm (f32 stats) fused with a bias-free projection. x: (N, D) f32 -> (N, M) bf16."""
    N, D = x.shape
    Mo = w.shape[1]
    blk, grid = _row_grid(N, block_rows)
    return pl.pallas_call(
        _ln_matmul_kernel,
        out_shape=jax.ShapeDtypeStruct((N, Mo), jnp.bfloat16),
        grid=grid,
        in_specs=[
            pl.BlockSpec((blk, D), lambda i: (i, 0)),
            pl.BlockSpec((1, D), lambda i: (0, 0)),
            pl.BlockSpec((1, D), lambda i: (0, 0)),
            pl.BlockSpec((D, Mo), lambda i: (0, 0)),
        ],
        out_specs=pl.BlockSpec((blk, Mo), lambda i: (i, 0)),
        compiler_params=_row_params(),
    )(x, g, b, w)


def _ln_ff_kernel(x_ref, g_ref, b_ref, w1_ref, b1_ref, w2_ref, b2_ref, o_ref):
    y = _layernorm(x_ref[...], g_ref[...], b_ref[...])
    h = jnp.dot(y.astype(jnp.bfloat16), w1_ref[...],
                preferred_element_type=jnp.float32) + b1_ref[...]
    h = jnp.maximum(h, 0.0)
    o_ref[...] = (jnp.dot(h.astype(jnp.bfloat16), w2_ref[...],
                          preferred_element_type=jnp.float32)
                  + b2_ref[...]).astype(o_ref.dtype)


def ln_positionwise_ff(lp, x, block_rows=BLOCK_ROWS):
    """Fused LayerNorm2 + PositionwiseFF. x: (T, B, D) f32 -> (T, B, D) bf16."""
    T, B, D = x.shape
    F = lp["ff"]["W1"].shape[1]
    N = T * B
    blk, grid = _row_grid(N, block_rows)
    out = pl.pallas_call(
        _ln_ff_kernel,
        out_shape=jax.ShapeDtypeStruct((N, D), jnp.bfloat16),
        grid=grid,
        in_specs=[
            pl.BlockSpec((blk, D), lambda i: (i, 0)),
            pl.BlockSpec((1, D), lambda i: (0, 0)),
            pl.BlockSpec((1, D), lambda i: (0, 0)),
            pl.BlockSpec((D, F), lambda i: (0, 0)),
            pl.BlockSpec((1, F), lambda i: (0, 0)),
            pl.BlockSpec((F, D), lambda i: (0, 0)),
            pl.BlockSpec((1, D), lambda i: (0, 0)),
        ],
        out_specs=pl.BlockSpec((blk, D), lambda i: (i, 0)),
        compiler_params=_row_params(),
    )(x.reshape(N, D), lp["ln2_g"], lp["ln2_b"],
      lp["ff"]["W1"], lp["ff"]["b1"], lp["ff"]["W2"], lp["ff"]["b2"])
    return out.reshape(T, B, D)


def _sigmoid(t):
    return 1.0 / (1.0 + jnp.exp(-t))


def _gating_kernel(x_ref, y_ref, wrzg_ref, bwrzg_ref, urz_ref, burz_ref,
                   ug_ref, bug_ref, o_ref, *, bg, d):
    x = x_ref[...]                                   # (rows, D) f32 residual
    xb = x.astype(jnp.bfloat16)
    yb = y_ref[...].astype(jnp.bfloat16)

    # Fused gate matmuls: [Wr|Wz|Wg] on y, [Ur|Uz] on x, Ug on (r*x).
    wy = jnp.dot(yb, wrzg_ref[...], preferred_element_type=jnp.float32) + bwrzg_ref[...]
    ux = jnp.dot(xb, urz_ref[...], preferred_element_type=jnp.float32) + burz_ref[...]

    r = _sigmoid(wy[:, :d] + ux[:, :d])
    z = _sigmoid(wy[:, d:2 * d] + ux[:, d:2 * d] - bg)
    hc = jnp.tanh(wy[:, 2 * d:] +
                  jnp.dot((r * x).astype(jnp.bfloat16), ug_ref[...],
                          preferred_element_type=jnp.float32) + bug_ref[...])
    o_ref[...] = (1.0 - z) * x + z * hc


def gating(gp, x, y, bg=0.1, block_rows=BLOCK_ROWS):
    """GRU-style gating; x (residual) f32, y (branch) bf16 -> f32."""
    T, B, D = x.shape
    N = T * B
    blk, grid = _row_grid(N, block_rows)
    row_spec = pl.BlockSpec((blk, D), lambda i: (i, 0))

    def const(shape):
        return pl.BlockSpec(shape, lambda i: (0, 0))

    out = pl.pallas_call(
        partial(_gating_kernel, bg=bg, d=D),
        out_shape=jax.ShapeDtypeStruct((N, D), jnp.float32),
        grid=grid,
        in_specs=[row_spec, row_spec,
                  const((D, 3 * D)), const((1, 3 * D)),
                  const((D, 2 * D)), const((1, 2 * D)),
                  const((D, D)), const((1, D))],
        out_specs=row_spec,
        compiler_params=_row_params(),
    )(x.reshape(N, D), y.reshape(N, D),
      gp["Wrzg"], gp["bWrzg"], gp["Urz"], gp["bUrz"], gp["Ug"], gp["bUg"])
    return out.reshape(T, B, D)


# ---------------------------------------------------------------------------
# Fused relative multi-head attention (per batch, per head), W_out fused in epilogue
# ---------------------------------------------------------------------------

def _attn_kernel(*refs, scale, T, M):
    if M > 0:
        (q_ref, kc_ref, vc_ref, km_ref, vm_ref,
         p_ref, u_ref, vb_ref, wo_ref, o_ref, acc_ref) = refs
    else:
        (q_ref, kc_ref, vc_ref,
         p_ref, u_ref, vb_ref, wo_ref, o_ref, acc_ref) = refs
        km_ref = vm_ref = None

    h = pl.program_id(1)
    J = T + M

    q = q_ref[0, 0].astype(jnp.float32)              # (T, dh)
    if M > 0:
        k = jnp.concatenate([km_ref[0, 0], kc_ref[0, 0]], axis=0)   # (J, dh) bf16
        v = jnp.concatenate([vm_ref[0, 0], vc_ref[0, 0]], axis=0)   # (J, dh) bf16
    else:
        k = kc_ref[0, 0]
        v = vc_ref[0, 0]
    p = p_ref[0]                                     # (Jp, dh) bf16, zero rows beyond J

    qu = (q + u_ref[0]).astype(jnp.bfloat16)         # (T, dh)
    qv = (q + vb_ref[0]).astype(jnp.bfloat16)

    dims = (((1,), (1,)), ((), ()))                  # contract dh with dh (rhs transposed)
    content = jax.lax.dot_general(qu, k, dims, preferred_element_type=jnp.float32)   # (T, J)
    pos = jax.lax.dot_general(qv, p, dims, preferred_element_type=jnp.float32)       # (T, Jp)

    # Transformer-XL relative shift: shifted[i, j] = pos[i, j + T - 1 - i].  Implemented as one
    # strided lane rotation (per-row amount (Jp - T + 1) + i, circular over the 128-aligned Jp);
    # wrapped positions land only on causally-masked entries, as in the PyTorch pad/view trick.
    if T > 1:
        pos = pltpu.roll(pos, shift=p.shape[0] - (T - 1), axis=1, stride=1, stride_axis=0)

    logits = (content + pos[:, :J]) * scale
    row = jax.lax.broadcasted_iota(jnp.int32, (T, J), 0)
    col = jax.lax.broadcasted_iota(jnp.int32, (T, J), 1)
    logits = jnp.where(col > row + M, jnp.float32(-1e30), logits)    # key j > query i + M

    m = jnp.max(logits, axis=-1, keepdims=True)
    e = jnp.exp(logits - m)
    attn = e * pl.reciprocal(jnp.sum(e, axis=-1, keepdims=True), approx=True)

    awv = jnp.dot(attn.astype(jnp.bfloat16), v, preferred_element_type=jnp.float32)  # (T, dh)

    @pl.when(h == 0)
    def _():
        acc_ref[...] = jnp.zeros_like(acc_ref)

    # Fused output projection: accumulate this head's dh-slab of W_out into the (T, D) output.
    acc_ref[...] += jnp.dot(awv.astype(jnp.bfloat16), wo_ref[0],
                            preferred_element_type=jnp.float32)

    @pl.when(h == pl.num_programs(1) - 1)
    def _():
        o_ref[0] = acc_ref[...].astype(o_ref.dtype)


def fused_attention(q, k_cur, v_cur, k_mem, v_mem, p_hjd, u3, v3, w_out3, *, scale, T, M):
    """q/k_cur/v_cur: (B,H,T,dh); k_mem/v_mem: (B,H,M,dh) or None; p_hjd: (H,Jp,dh);
    u3/v3: (H,1,dh); w_out3: (H,dh,D). Returns (B,T,D) bf16 with W_out already applied."""
    B, H, _, dh = q.shape
    D = w_out3.shape[-1]
    Jp = p_hjd.shape[1]

    def im_bh(b, h):
        return (b, h, 0, 0)

    def im_h(b, h):
        return (h, 0, 0)

    def im_out(b, h):
        return (b, 0, 0)

    in_specs = [
        pl.BlockSpec((1, 1, T, dh), im_bh),     # q
        pl.BlockSpec((1, 1, T, dh), im_bh),     # k_cur
        pl.BlockSpec((1, 1, T, dh), im_bh),     # v_cur
    ]
    args = [q, k_cur, v_cur]
    if M > 0:
        in_specs += [pl.BlockSpec((1, 1, M, dh), im_bh),
                     pl.BlockSpec((1, 1, M, dh), im_bh)]
        args += [k_mem, v_mem]
    in_specs += [
        pl.BlockSpec((1, Jp, dh), im_h),        # positional projection (per head)
        pl.BlockSpec((1, 1, dh), im_h),         # u
        pl.BlockSpec((1, 1, dh), im_h),         # v
        pl.BlockSpec((1, dh, D), im_h),         # W_out slab for this head
    ]
    args += [p_hjd, u3, v3, w_out3]

    return pl.pallas_call(
        partial(_attn_kernel, scale=scale, T=T, M=M),
        out_shape=jax.ShapeDtypeStruct((B, T, D), jnp.bfloat16),
        grid=(B, H),
        in_specs=in_specs,
        out_specs=pl.BlockSpec((1, T, D), im_out),
        scratch_shapes=[pltpu.VMEM((T, D), jnp.float32)],
        compiler_params=pltpu.CompilerParams(
            dimension_semantics=("parallel", "arbitrary"),
            vmem_limit_bytes=_VMEM_LIMIT,
        ),
    )(*args)


# ---------------------------------------------------------------------------
# Transformer-XL orchestration (plain JAX glue)
# ---------------------------------------------------------------------------

def multi_head_attention_xl(lp, u, vb, x, pos_embs_padded, mem, n_heads, d_head):
    T, B, D = x.shape
    M = mem.shape[0]
    H, dh = n_heads, d_head
    Hd = H * dh
    Jp = pos_embs_padded.shape[0]
    mp = lp["mha"]

    # Fused LayerNorm1 + [W_q | W_kv] projection over the current segment.  Memory rows bypass
    # LayerNorm1 and use W_kv only, matching the PyTorch module exactly.
    qkv = ln_matmul(x.reshape(T * B, D), lp["ln1_g"], lp["ln1_b"], mp["W_qkv"])   # (T*B, 3Hd) bf16
    qkv = qkv.reshape(T, B, 3, H, dh).transpose(2, 1, 3, 0, 4)                     # (3,B,H,T,dh)
    q, k_cur, v_cur = qkv[0], qkv[1], qkv[2]

    if M > 0:
        kv_m = matmul_rows(mem.reshape(M * B, D), mp["W_kv"])                      # (M*B, 2Hd) bf16
        kv_m = kv_m.reshape(M, B, 2, H, dh).transpose(2, 1, 3, 0, 4)               # (2,B,H,M,dh)
        k_mem, v_mem = kv_m[0], kv_m[1]
    else:
        k_mem = v_mem = None

    # Positional projection (shared over batch); rows already lane-padded to a 128 multiple.
    p = matmul_rows(pos_embs_padded, mp["W_p"])                                    # (Jp, Hd) bf16
    p_hjd = p.reshape(Jp, H, dh).transpose(1, 0, 2)                                # (H, Jp, dh)

    scale = 1.0 / (dh ** 0.5)
    out_btd = fused_attention(q, k_cur, v_cur, k_mem, v_mem, p_hjd,
                              u.reshape(H, 1, dh), vb.reshape(H, 1, dh),
                              mp["W_out"].reshape(H, dh, D),
                              scale=scale, T=T, M=M)                               # (B,T,D) bf16
    return out_btd.transpose(1, 0, 2)                                              # (T,B,D) bf16


def encoder_layer(lp, u, vb, x, pos_embs_padded, mem, n_heads, d_head):
    src2 = multi_head_attention_xl(lp, u, vb, x, pos_embs_padded, mem, n_heads, d_head)
    src = gating(lp["gate1"], x, src2)
    src2 = ln_positionwise_ff(lp, src)
    src = gating(lp["gate2"], src, src2)
    return src


def stable_transformer_xl_forward(params, inputs, memory, *, n_heads, d_head):
    T, B, D = inputs.shape
    M = memory[0].shape[0]
    J = T + M

    # Relative positional embeddings (dropout = identity); trim to D columns if D is odd.
    pos_ips = jnp.arange(J - 1, -1, -1, dtype=jnp.float32)
    inv_freq = 1.0 / (10000.0 ** (jnp.arange(0, D, 2, dtype=jnp.float32) / D))
    sinusoid = pos_ips[:, None] * inv_freq[None, :]
    pos_embs = jnp.concatenate([jnp.sin(sinusoid), jnp.cos(sinusoid)], axis=-1)[:, :D]

    # Lane-pad the positional table to a 128 multiple once (shared by all layers) so the in-kernel
    # strided roll operates on a tile-aligned dimension; extra rows project to zero (bias-free).
    Jp = ((J + 127) // 128) * 128
    pos_embs_padded = jnp.pad(pos_embs, ((0, Jp - J), (0, 0)))

    hidden_states = [inputs]
    layer_out = inputs
    for mem, lp in zip(memory, params["layers"]):
        layer_out = encoder_layer(lp, params["u"], params["v"], layer_out,
                                  pos_embs_padded, mem, n_heads, d_head)
        hidden_states.append(layer_out)

    # update_memory: keep the last M timesteps of [mem; hidden].
    new_memory = [
        jnp.concatenate([m, h], axis=0)[T:T + M]
        for m, h in zip(memory, hidden_states)
    ]
    return {"logits": layer_out, "memory": new_memory}


# ---------------------------------------------------------------------------
# Deterministic parameter init (shapes match the PyTorch module __init__)
# ---------------------------------------------------------------------------

def init_params(key, d_input, n_layers, n_heads, d_head, d_ff):
    D, H, dh, F = d_input, n_heads, d_head, d_ff
    Hd = H * dh
    state = {"key": key}

    def dense(shape, scale=0.1):
        state["key"], sub = jax.random.split(state["key"])
        return (scale * jax.random.normal(sub, shape)).astype(jnp.float32)

    def gate_params():
        wr, wz, wg = dense((D, D)), dense((D, D)), dense((D, D))
        ur, uz = dense((D, D)), dense((D, D))
        return {
            "Wrzg": jnp.concatenate([wr, wz, wg], axis=1).astype(jnp.bfloat16),
            "bWrzg": jnp.zeros((1, 3 * D), jnp.float32),
            "Urz": jnp.concatenate([ur, uz], axis=1).astype(jnp.bfloat16),
            "bUrz": jnp.zeros((1, 2 * D), jnp.float32),
            "Ug": dense((D, D)).astype(jnp.bfloat16),
            "bUg": jnp.zeros((1, D), jnp.float32),
        }

    layers = []
    for _ in range(n_layers):
        w_q = dense((D, Hd))           # Linear(d_input, H*dh, bias=False)
        w_kv = dense((D, 2 * Hd))      # Linear(d_input, 2*H*dh, bias=False)
        layers.append({
            "ln1_g": jnp.ones((1, D), jnp.float32),
            "ln1_b": jnp.zeros((1, D), jnp.float32),
            "ln2_g": jnp.ones((1, D), jnp.float32),
            "ln2_b": jnp.zeros((1, D), jnp.float32),
            "gate1": gate_params(),
            "gate2": gate_params(),
            "mha": {
                "W_qkv": jnp.concatenate([w_q, w_kv], axis=1).astype(jnp.bfloat16),
                "W_kv": w_kv.astype(jnp.bfloat16),
                "W_p": dense((D, Hd)).astype(jnp.bfloat16),
                "W_out": dense((Hd, D)).astype(jnp.bfloat16),
            },
            "ff": {
                "W1": dense((D, F)).astype(jnp.bfloat16),
                "b1": jnp.zeros((1, F), jnp.float32),
                "W2": dense((F, D)).astype(jnp.bfloat16),
                "b2": jnp.zeros((1, D), jnp.float32),
            },
        })
    return {
        "layers": layers,
        "u": dense((H, dh)),
        "v": dense((H, dh)),
    }


# ---------------------------------------------------------------------------
# Demo
# ---------------------------------------------------------------------------

if __name__ == "__main__":
    D_INPUT, N_LAYERS, N_HEADS, D_HEAD, D_FF = 32, 2, 4, 8, 64
    T, B, MEM_LEN = 8, 2, 8

    key = jax.random.PRNGKey(0)
    pkey, xkey = jax.random.split(key)
    params = init_params(pkey, D_INPUT, N_LAYERS, N_HEADS, D_HEAD, D_FF)

    inputs = jax.random.normal(xkey, (T, B, D_INPUT), dtype=jnp.float32)
    memory = [jnp.zeros((MEM_LEN, B, D_INPUT), jnp.float32) for _ in range(N_LAYERS + 1)]

    fwd = jax.jit(partial(stable_transformer_xl_forward, n_heads=N_HEADS, d_head=D_HEAD))
    out = fwd(params, inputs, memory)
    jax.block_until_ready(out["logits"])
    for m in out["memory"]:
        jax.block_until_ready(m)

    assert out["logits"].shape == (T, B, D_INPUT)
    assert len(out["memory"]) == N_LAYERS + 1
    assert all(m.shape == (MEM_LEN, B, D_INPUT) for m in out["memory"])
    assert bool(jnp.all(jnp.isfinite(out["logits"])))
    print("KERNEL_OK")
</pallas_src>

<mosaic_0001>
module attributes {stable_mosaic.version = 11 : i64} {
  func.func @_ln_matmul_kernel(%arg0: i32, %arg1: memref<16x32xf32, #tpu.memory_space<vmem>>, %arg2: memref<1x32xf32, #tpu.memory_space<vmem>>, %arg3: memref<1x32xf32, #tpu.memory_space<vmem>>, %arg4: memref<32x96xbf16, #tpu.memory_space<vmem>>, %arg5: memref<16x96xbf16, #tpu.memory_space<vmem>>) attributes {dimension_semantics = [#tpu.dimension_semantics<parallel>], iteration_bounds = array<i64: 1>, scalar_prefetch = 0 : i64, scratch_operands = 0 : i64, tpu.core_type = #tpu.core_type<tc>, window_params = [{transform_indices = @transform_0, window_bounds = array<i64: 16, 32>}, {pipeline_mode = #tpu.pipeline_mode<synchronous>, transform_indices = @transform_1, window_bounds = array<i64: 1, 32>}, {pipeline_mode = #tpu.pipeline_mode<synchronous>, transform_indices = @transform_2, window_bounds = array<i64: 1, 32>}, {pipeline_mode = #tpu.pipeline_mode<synchronous>, transform_indices = @transform_3, window_bounds = array<i64: 32, 96>}, {transform_indices = @transform_4, window_bounds = array<i64: 16, 96>}]} {
    %c0 = arith.constant 0 : index
    %c0_0 = arith.constant 0 : index
    %0 = vector.load %arg1[%c0, %c0_0] : memref<16x32xf32, #tpu.memory_space<vmem>>, vector<16x32xf32>
    %c0_1 = arith.constant 0 : index
    %c0_2 = arith.constant 0 : index
    %1 = vector.load %arg2[%c0_1, %c0_2] : memref<1x32xf32, #tpu.memory_space<vmem>>, vector<1x32xf32>
    %c0_3 = arith.constant 0 : index
    %c0_4 = arith.constant 0 : index
    %2 = vector.load %arg3[%c0_3, %c0_4] : memref<1x32xf32, #tpu.memory_space<vmem>>, vector<1x32xf32>
    %cst = arith.constant dense<0.000000e+00> : vector<16xf32>
    %3 = vector.multi_reduction <add>, %0, %cst [1] : vector<16x32xf32> to vector<16xf32>
    %4 = vector.shape_cast %3 : vector<16xf32> to vector<16x1xf32>
    %cst_5 = arith.constant 3.200000e+01 : f32
    %5 = vector.broadcast %cst_5 : f32 to vector<16x1xf32>
    %6 = arith.divf %4, %5 : vector<16x1xf32>
    %7 = vector.broadcast %6 : vector<16x1xf32> to vector<16x32xf32>
    %8 = arith.subf %0, %7 : vector<16x32xf32>
    %9 = arith.mulf %8, %8 : vector<16x32xf32>
    %cst_6 = arith.constant dense<0.000000e+00> : vector<16xf32>
    %10 = vector.multi_reduction <add>, %9, %cst_6 [1] : vector<16x32xf32> to vector<16xf32>
    %11 = vector.shape_cast %10 : vector<16xf32> to vector<16x1xf32>
    %cst_7 = arith.constant 3.200000e+01 : f32
    %12 = vector.broadcast %cst_7 : f32 to vector<16x1xf32>
    %13 = arith.divf %11, %12 : vector<16x1xf32>
    %cst_8 = arith.constant 9.99999974E-6 : f32
    %14 = vector.broadcast %cst_8 : f32 to vector<16x1xf32>
    %15 = arith.addf %13, %14 : vector<16x1xf32>
    %16 = math.rsqrt %15 : vector<16x1xf32>
    %17 = vector.broadcast %16 : vector<16x1xf32> to vector<16x32xf32>
    %18 = arith.mulf %8, %17 : vector<16x32xf32>
    %19 = vector.broadcast %1 : vector<1x32xf32> to vector<16x32xf32>
    %20 = arith.mulf %18, %19 : vector<16x32xf32>
    %21 = vector.broadcast %2 : vector<1x32xf32> to vector<16x32xf32>
    %22 = arith.addf %20, %21 : vector<16x32xf32>
    %23 = arith.truncf %22 : vector<16x32xf32> to vector<16x32xbf16>
    %c0_9 = arith.constant 0 : index
    %c0_10 = arith.constant 0 : index
    %24 = vector.load %arg4[%c0_9, %c0_10] : memref<32x96xbf16, #tpu.memory_space<vmem>>, vector<32x96xbf16>
    %cst_11 = arith.constant dense<0.000000e+00> : vector<16x96xf32>
    %25 = tpu.matmul %23, %24, %cst_11 {dimension_numbers = #tpu.dot_dimension_numbers<[1], [0], [0], [1], [0, 0, 1, 1], [], []>} : vector<16x32xbf16>, vector<32x96xbf16>, vector<16x96xf32> -> vector<16x96xf32>
    %26 = arith.truncf %25 : vector<16x96xf32> to vector<16x96xbf16>
    %c0_12 = arith.constant 0 : index
    %c0_13 = arith.constant 0 : index
    %27 = vector.load %arg5[%c0_12, %c0_13] : memref<16x96xbf16, #tpu.memory_space<vmem>>, vector<16x96xbf16>
    tpu.vector_store %arg5[%c0_12, %c0_13], %26 {strides = array<i32>} : memref<16x96xbf16, #tpu.memory_space<vmem>>, vector<16x96xbf16>,
    return
  }
  func.func @transform_0(%arg0: i32) -> (i32, i32) {
    %c0_i32 = arith.constant 0 : i32
    %c0_i32_0 = arith.constant 0 : i32
    return %arg0, %c0_i32 : i32, i32
  }
  func.func @transform_1(%arg0: i32) -> (i32, i32) {
    %c0_i32 = arith.constant 0 : i32
    %c0_i32_0 = arith.constant 0 : i32
    %c0_i32_1 = arith.constant 0 : i32
    return %c0_i32, %c0_i32_0 : i32, i32
  }
  func.func @transform_2(%arg0: i32) -> (i32, i32) {
    %c0_i32 = arith.constant 0 : i32
    %c0_i32_0 = arith.constant 0 : i32
    %c0_i32_1 = arith.constant 0 : i32
    return %c0_i32, %c0_i32_0 : i32, i32
  }
  func.func @transform_3(%arg0: i32) -> (i32, i32) {
    %c0_i32 = arith.constant 0 : i32
    %c0_i32_0 = arith.constant 0 : i32
    %c0_i32_1 = arith.constant 0 : i32
    return %c0_i32, %c0_i32_0 : i32, i32
  }
  func.func @transform_4(%arg0: i32) -> (i32, i32) {
    %c0_i32 = arith.constant 0 : i32
    %c0_i32_0 = arith.constant 0 : i32
    return %arg0, %c0_i32 : i32, i32
  }
}

module attributes {stable_mosaic.version = 11 : i64} {
  func.func @_matmul_kernel(%arg0: i32, %arg1: memref<16x32xf32, #tpu.memory_space<vmem>>, %arg2: memref<32x64xbf16, #tpu.memory_space<vmem>>, %arg3: memref<16x64xbf16, #tpu.memory_space<vmem>>) attributes {dimension_semantics = [#tpu.dimension_semantics<parallel>], iteration_bounds = array<i64: 1>, scalar_prefetch = 0 : i64, scratch_operands = 0 : i64, tpu.core_type = #tpu.core_type<tc>, window_params = [{transform_indices = @transform_0, window_bounds = array<i64: 16, 32>}, {pipeline_mode = #tpu.pipeline_mode<synchronous>, transform_indices = @transform_1, window_bounds = array<i64: 32, 64>}, {transform_indices = @transform_2, window_bounds = array<i64: 16, 64>}]} {
    %c0 = arith.constant 0 : index
    %c0_0 = arith.constant 0 : index
    %0 = vector.load %arg1[%c0, %c0_0] : memref<16x32xf32, #tpu.memory_space<vmem>>, vector<16x32xf32>
    %1 = arith.truncf %0 : vector<16x32xf32> to vector<16x32xbf16>
    %c0_1 = arith.constant 0 : index
    %c0_2 = arith.constant 0 : index
    %2 = vector.load %arg2[%c0_1, %c0_2] : memref<32x64xbf16, #tpu.memory_space<vmem>>, vector<32x64xbf16>
    %cst = arith.constant dense<0.000000e+00> : vector<16x64xf32>
    %3 = tpu.matmul %1, %2, %cst {dimension_numbers = #tpu.dot_dimension_numbers<[1], [0], [0], [1], [0, 0, 1, 1], [], []>} : vector<16x32xbf16>, vector<32x64xbf16>, vector<16x64xf32> -> vector<16x64xf32>
    %4 = arith.truncf %3 : vector<16x64xf32> to vector<16x64xbf16>
    %c0_3 = arith.constant 0 : index
    %c0_4 = arith.constant 0 : index
    %5 = vector.load %arg3[%c0_3, %c0_4] : memref<16x64xbf16, #tpu.memory_space<vmem>>, vector<16x64xbf16>
    tpu.vector_store %arg3[%c0_3, %c0_4], %4 {strides = array<i32>} : memref<16x64xbf16, #tpu.memory_space<vmem>>, vector<16x64xbf16>,
    return
  }
  func.func @transform_0(%arg0: i32) -> (i32, i32) {
    %c0_i32 = arith.constant 0 : i32
    %c0_i32_0 = arith.constant 0 : i32
    return %arg0, %c0_i32 : i32, i32
  }
  func.func @transform_1(%arg0: i32) -> (i32, i32) {
    %c0_i32 = arith.constant 0 : i32
    %c0_i32_0 = arith.constant 0 : i32
    %c0_i32_1 = arith.constant 0 : i32
    return %c0_i32, %c0_i32_0 : i32, i32
  }
  func.func @transform_2(%arg0: i32) -> (i32, i32) {
    %c0_i32 = arith.constant 0 : i32
    %c0_i32_0 = arith.constant 0 : i32
    return %arg0, %c0_i32 : i32, i32
  }
}

module attributes {stable_mosaic.version = 11 : i64} {
  func.func @_matmul_kernel(%arg0: i32, %arg1: memref<128x32xf32, #tpu.memory_space<vmem>>, %arg2: memref<32x32xbf16, #tpu.memory_space<vmem>>, %arg3: memref<128x32xbf16, #tpu.memory_space<vmem>>) attributes {dimension_semantics = [#tpu.dimension_semantics<parallel>], iteration_bounds = array<i64: 1>, scalar_prefetch = 0 : i64, scratch_operands = 0 : i64, tpu.core_type = #tpu.core_type<tc>, window_params = [{transform_indices = @transform_0, window_bounds = array<i64: 128, 32>}, {pipeline_mode = #tpu.pipeline_mode<synchronous>, transform_indices = @transform_1, window_bounds = array<i64: 32, 32>}, {transform_indices = @transform_2, window_bounds = array<i64: 128, 32>}]} {
    %c0 = arith.constant 0 : index
    %c0_0 = arith.constant 0 : index
    %0 = vector.load %arg1[%c0, %c0_0] : memref<128x32xf32, #tpu.memory_space<vmem>>, vector<128x32xf32>
    %1 = arith.truncf %0 : vector<128x32xf32> to vector<128x32xbf16>
    %c0_1 = arith.constant 0 : index
    %c0_2 = arith.constant 0 : index
    %2 = vector.load %arg2[%c0_1, %c0_2] : memref<32x32xbf16, #tpu.memory_space<vmem>>, vector<32x32xbf16>
    %cst = arith.constant dense<0.000000e+00> : vector<128x32xf32>
    %3 = tpu.matmul %1, %2, %cst {dimension_numbers = #tpu.dot_dimension_numbers<[1], [0], [0], [1], [0, 0, 1, 1], [], []>} : vector<128x32xbf16>, vector<32x32xbf16>, vector<128x32xf32> -> vector<128x32xf32>
    %4 = arith.truncf %3 : vector<128x32xf32> to vector<128x32xbf16>
    %c0_3 = arith.constant 0 : index
    %c0_4 = arith.constant 0 : index
    %5 = vector.load %arg3[%c0_3, %c0_4] : memref<128x32xbf16, #tpu.memory_space<vmem>>, vector<128x32xbf16>
    tpu.vector_store %arg3[%c0_3, %c0_4], %4 {strides = array<i32>} : memref<128x32xbf16, #tpu.memory_space<vmem>>, vector<128x32xbf16>,
    return
  }
  func.func @transform_0(%arg0: i32) -> (i32, i32) {
    %c0_i32 = arith.constant 0 : i32
    %c0_i32_0 = arith.constant 0 : i32
    return %arg0, %c0_i32 : i32, i32
  }
  func.func @transform_1(%arg0: i32) -> (i32, i32) {
    %c0_i32 = arith.constant 0 : i32
    %c0_i32_0 = arith.constant 0 : i32
    %c0_i32_1 = arith.constant 0 : i32
    return %c0_i32, %c0_i32_0 : i32, i32
  }
  func.func @transform_2(%arg0: i32) -> (i32, i32) {
    %c0_i32 = arith.constant 0 : i32
    %c0_i32_0 = arith.constant 0 : i32
    return %arg0, %c0_i32 : i32, i32
  }
}

module attributes {stable_mosaic.version = 11 : i64} {
  func.func @_attn_kernel(%arg0: i32, %arg1: i32, %arg2: memref<1x1x8x8xbf16, #tpu.memory_space<vmem>>, %arg3: memref<1x1x8x8xbf16, #tpu.memory_space<vmem>>, %arg4: memref<1x1x8x8xbf16, #tpu.memory_space<vmem>>, %arg5: memref<1x1x8x8xbf16, #tpu.memory_space<vmem>>, %arg6: memref<1x1x8x8xbf16, #tpu.memory_space<vmem>>, %arg7: memref<1x128x8xbf16, #tpu.memory_space<vmem>>, %arg8: memref<1x1x8xf32, #tpu.memory_space<vmem>>, %arg9: memref<1x1x8xf32, #tpu.memory_space<vmem>>, %arg10: memref<1x8x32xbf16, #tpu.memory_space<vmem>>, %arg11: memref<1x8x32xbf16, #tpu.memory_space<vmem>>, %arg12: memref<8x32xf32, #tpu.memory_space<vmem>>) attributes {dimension_semantics = [#tpu.dimension_semantics<parallel>, #tpu.dimension_semantics<arbitrary>], iteration_bounds = array<i64: 2, 4>, scalar_prefetch = 0 : i64, scratch_operands = 1 : i64, tpu.core_type = #tpu.core_type<tc>, window_params = [{transform_indices = @transform_0, window_bounds = array<i64: 1, 1, 8, 8>}, {transform_indices = @transform_1, window_bounds = array<i64: 1, 1, 8, 8>}, {transform_indices = @transform_2, window_bounds = array<i64: 1, 1, 8, 8>}, {transform_indices = @transform_3, window_bounds = array<i64: 1, 1, 8, 8>}, {transform_indices = @transform_4, window_bounds = array<i64: 1, 1, 8, 8>}, {transform_indices = @transform_5, window_bounds = array<i64: 1, 128, 8>}, {transform_indices = @transform_6, window_bounds = array<i64: 1, 1, 8>}, {transform_indices = @transform_7, window_bounds = array<i64: 1, 1, 8>}, {transform_indices = @transform_8, window_bounds = array<i64: 1, 8, 32>}, {transform_indices = @transform_9, window_bounds = array<i64: 1, 8, 32>}]} {
    %c0 = arith.constant 0 : index
    %c0_0 = arith.constant 0 : index
    %c0_1 = arith.constant 0 : index
    %c0_2 = arith.constant 0 : index
    %0 = vector.load %arg2[%c0, %c0_0, %c0_1, %c0_2] : memref<1x1x8x8xbf16, #tpu.memory_space<vmem>>, vector<1x1x8x8xbf16>
    %1 = vector.shape_cast %0 : vector<1x1x8x8xbf16> to vector<8x8xbf16>
    %2 = arith.extf %1 : vector<8x8xbf16> to vector<8x8xf32>
    %c0_3 = arith.constant 0 : index
    %c0_4 = arith.constant 0 : index
    %c0_5 = arith.constant 0 : index
    %c0_6 = arith.constant 0 : index
    %3 = vector.load %arg5[%c0_3, %c0_4, %c0_5, %c0_6] : memref<1x1x8x8xbf16, #tpu.memory_space<vmem>>, vector<1x1x8x8xbf16>
    %4 = vector.shape_cast %3 : vector<1x1x8x8xbf16> to vector<8x8xbf16>
    %c0_7 = arith.constant 0 : index
    %c0_8 = arith.constant 0 : index
    %c0_9 = arith.constant 0 : index
    %c0_10 = arith.constant 0 : index
    %5 = vector.load %arg3[%c0_7, %c0_8, %c0_9, %c0_10] : memref<1x1x8x8xbf16, #tpu.memory_space<vmem>>, vector<1x1x8x8xbf16>
    %6 = vector.shape_cast %5 : vector<1x1x8x8xbf16> to vector<8x8xbf16>
    %7 = tpu.concatenate %4, %6 in 0 : vector<8x8xbf16>, vector<8x8xbf16> -> vector<16x8xbf16>
    %c0_11 = arith.constant 0 : index
    %c0_12 = arith.constant 0 : index
    %c0_13 = arith.constant 0 : index
    %c0_14 = arith.constant 0 : index
    %8 = vector.load %arg6[%c0_11, %c0_12, %c0_13, %c0_14] : memref<1x1x8x8xbf16, #tpu.memory_space<vmem>>, vector<1x1x8x8xbf16>
    %9 = vector.shape_cast %8 : vector<1x1x8x8xbf16> to vector<8x8xbf16>
    %c0_15 = arith.constant 0 : index
    %c0_16 = arith.constant 0 : index
    %c0_17 = arith.constant 0 : index
    %c0_18 = arith.constant 0 : index
    %10 = vector.load %arg4[%c0_15, %c0_16, %c0_17, %c0_18] : memref<1x1x8x8xbf16, #tpu.memory_space<vmem>>, vector<1x1x8x8xbf16>
    %11 = vector.shape_cast %10 : vector<1x1x8x8xbf16> to vector<8x8xbf16>
    %12 = tpu.concatenate %9, %11 in 0 : vector<8x8xbf16>, vector<8x8xbf16> -> vector<16x8xbf16>
    %c0_19 = arith.constant 0 : index
    %c0_20 = arith.constant 0 : index
    %c0_21 = arith.constant 0 : index
    %13 = vector.load %arg7[%c0_19, %c0_20, %c0_21] : memref<1x128x8xbf16, #tpu.memory_space<vmem>>, vector<1x128x8xbf16>
    %14 = vector.shape_cast %13 : vector<1x128x8xbf16> to vector<128x8xbf16>
    %c0_22 = arith.constant 0 : index
    %c0_23 = arith.constant 0 : index
    %c0_24 = arith.constant 0 : index
    %15 = vector.load %arg8[%c0_22, %c0_23, %c0_24] : memref<1x1x8xf32, #tpu.memory_space<vmem>>, vector<1x1x8xf32>
    %16 = vector.shape_cast %15 : vector<1x1x8xf32> to vector<1x8xf32>
    %17 = vector.broadcast %16 : vector<1x8xf32> to vector<8x8xf32>
    %18 = arith.addf %2, %17 : vector<8x8xf32>
    %19 = arith.truncf %18 : vector<8x8xf32> to vector<8x8xbf16>
    %c0_25 = arith.constant 0 : index
    %c0_26 = arith.constant 0 : index
    %c0_27 = arith.constant 0 : index
    %20 = vector.load %arg9[%c0_25, %c0_26, %c0_27] : memref<1x1x8xf32, #tpu.memory_space<vmem>>, vector<1x1x8xf32>
    %21 = vector.shape_cast %20 : vector<1x1x8xf32> to vector<1x8xf32>
    %22 = vector.broadcast %21 : vector<1x8xf32> to vector<8x8xf32>
    %23 = arith.addf %2, %22 : vector<8x8xf32>
    %24 = arith.truncf %23 : vector<8x8xf32> to vector<8x8xbf16>
    %cst = arith.constant dense<0.000000e+00> : vector<8x16xf32>
    %25 = tpu.matmul %19, %7, %cst {dimension_numbers = #tpu.dot_dimension_numbers<[1], [1], [0], [0], [0, 0, 1, 0], [], []>} : vector<8x8xbf16>, vector<16x8xbf16>, vector<8x16xf32> -> vector<8x16xf32>
    %cst_28 = arith.constant dense<0.000000e+00> : vector<8x128xf32>
    %26 = tpu.matmul %24, %14, %cst_28 {dimension_numbers = #tpu.dot_dimension_numbers<[1], [1], [0], [0], [0, 0, 1, 0], [], []>} : vector<8x8xbf16>, vector<128x8xbf16>, vector<8x128xf32> -> vector<8x128xf32>
    %c121_i32 = arith.constant 121 : i32
    %27 = tpu.dynamic_rotate %26 by %c121_i32 dim 1 {stride = 1 : si32, stride_dimension = 0 : si32} : vector<8x128xf32>, i32 -> vector<8x128xf32>
    %28 = vector.extract_strided_slice %27 {offsets = [0, 0], sizes = [8, 16], strides = [1, 1]} : vector<8x128xf32> to vector<8x16xf32>
    %29 = arith.addf %25, %28 : vector<8x16xf32>
    %cst_29 = arith.constant 0.353553385 : f32
    %30 = vector.broadcast %cst_29 : f32 to vector<8x16xf32>
    %31 = arith.mulf %29, %30 : vector<8x16xf32>
    %32 = tpu.iota {dimensions = array<i32: 0>} : vector<8x16xi32>
    %33 = tpu.iota {dimensions = array<i32: 1>} : vector<8x16xi32>
    %c8_i32 = arith.constant 8 : i32
    %34 = vector.broadcast %c8_i32 : i32 to vector<8x16xi32>
    %35 = arith.addi %32, %34 : vector<8x16xi32>
    %36 = arith.cmpi sgt, %33, %35 : vector<8x16xi32>
    %cst_30 = arith.constant -1.000000e+30 : f32
    %37 = vector.broadcast %cst_30 : f32 to vector<8x16xf32>
    %38 = arith.select %36, %37, %31 : vector<8x16xi1>, vector<8x16xf32>
    %cst_31 = arith.constant dense<0xFF800000> : vector<8xf32>
    %39 = vector.multi_reduction <maximumf>, %38, %cst_31 [1] : vector<8x16xf32> to vector<8xf32>
    %40 = vector.shape_cast %39 : vector<8xf32> to vector<8x1xf32>
    %41 = vector.broadcast %40 : vector<8x1xf32> to vector<8x16xf32>
    %42 = arith.subf %38, %41 : vector<8x16xf32>
    %43 = math.exp %42 : vector<8x16xf32>
    %cst_32 = arith.constant dense<0.000000e+00> : vector<8xf32>
    %44 = vector.multi_reduction <add>, %43, %cst_32 [1] : vector<8x16xf32> to vector<8xf32>
    %45 = vector.shape_cast %44 : vector<8xf32> to vector<8x1xf32>
    %46 = tpu.reciprocal %45 {approx = true} : vector<8x1xf32> -> vector<8x1xf32>
    %47 = vector.broadcast %46 : vector<8x1xf32> to vector<8x16xf32>
    %48 = arith.mulf %43, %47 : vector<8x16xf32>
    %49 = arith.truncf %48 : vector<8x16xf32> to vector<8x16xbf16>
    %cst_33 = arith.constant dense<0.000000e+00> : vector<8x8xf32>
    %50 = tpu.matmul %49, %12, %cst_33 {dimension_numbers = #tpu.dot_dimension_numbers<[1], [0], [0], [1], [0, 0, 1, 1], [], []>} : vector<8x16xbf16>, vector<16x8xbf16>, vector<8x8xf32> -> vector<8x8xf32>
    %c0_i32 = arith.constant 0 : i32
    %51 = arith.cmpi eq, %arg1, %c0_i32 : i32
    %52 = arith.extui %51 : i1 to i32
    %c0_i32_34 = arith.constant 0 : i32
    %53 = arith.cmpi ne, %52, %c0_i32_34 : i32
    scf.if %53 {
      %cst_44 = arith.constant 0.000000e+00 : f32
      %64 = vector.broadcast %cst_44 : f32 to vector<8x32xf32>
      %c0_45 = arith.constant 0 : index
      %c0_46 = arith.constant 0 : index
      %65 = vector.load %arg12[%c0_45, %c0_46] : memref<8x32xf32, #tpu.memory_space<vmem>>, vector<8x32xf32>
      tpu.vector_store %arg12[%c0_45, %c0_46], %64 {strides = array<i32>} : memref<8x32xf32, #tpu.memory_space<vmem>>, vector<8x32xf32>,
    } else {
    }
    %c0_35 = arith.constant 0 : index
    %c0_36 = arith.constant 0 : index
    %54 = vector.load %arg12[%c0_35, %c0_36] : memref<8x32xf32, #tpu.memory_space<vmem>>, vector<8x32xf32>
    %55 = arith.truncf %50 : vector<8x8xf32> to vector<8x8xbf16>
    %c0_37 = arith.constant 0 : index
    %c0_38 = arith.constant 0 : index
    %c0_39 = arith.constant 0 : index
    %56 = vector.load %arg10[%c0_37, %c0_38, %c0_39] : memref<1x8x32xbf16, #tpu.memory_space<vmem>>, vector<1x8x32xbf16>
    %57 = vector.shape_cast %56 : vector<1x8x32xbf16> to vector<8x32xbf16>
    %cst_40 = arith.constant dense<0.000000e+00> : vector<8x32xf32>
    %58 = tpu.matmul %55, %57, %cst_40 {dimension_numbers = #tpu.dot_dimension_numbers<[1], [0], [0], [1], [0, 0, 1, 1], [], []>} : vector<8x8xbf16>, vector<8x32xbf16>, vector<8x32xf32> -> vector<8x32xf32>
    %59 = arith.addf %54, %58 : vector<8x32xf32>
    %c0_41 = arith.constant 0 : index
    %c0_42 = arith.constant 0 : index
    %60 = vector.load %arg12[%c0_41, %c0_42] : memref<8x32xf32, #tpu.memory_space<vmem>>, vector<8x32xf32>
    tpu.vector_store %arg12[%c0_41, %c0_42], %59 {strides = array<i32>} : memref<8x32xf32, #tpu.memory_space<vmem>>, vector<8x32xf32>,
    %c3_i32 = arith.constant 3 : i32
    %61 = arith.cmpi eq, %arg1, %c3_i32 : i32
    %62 = arith.extui %61 : i1 to i32
    %c0_i32_43 = arith.constant 0 : i32
    %63 = arith.cmpi ne, %62, %c0_i32_43 : i32
    scf.if %63 {
      %c0_44 = arith.constant 0 : index
      %c0_45 = arith.constant 0 : index
      %64 = vector.load %arg12[%c0_44, %c0_45] : memref<8x32xf32, #tpu.memory_space<vmem>>, vector<8x32xf32>
      %65 = arith.truncf %64 : vector<8x32xf32> to vector<8x32xbf16>
      %c0_46 = arith.constant 0 : index
      %c0_47 = arith.constant 0 : index
      %c0_48 = arith.constant 0 : index
      %66 = vector.load %arg11[%c0_46, %c0_47, %c0_48] : memref<1x8x32xbf16, #tpu.memory_space<vmem>>, vector<1x8x32xbf16>
      %67 = vector.shape_cast %66 : vector<1x8x32xbf16> to vector<8x32xbf16>
      %68 = vector.shape_cast %65 : vector<8x32xbf16> to vector<1x8x32xbf16>
      tpu.vector_store %arg11[%c0_46, %c0_47, %c0_48], %68 {strides = array<i32>} : memref<1x8x32xbf16, #tpu.memory_space<vmem>>, vector<1x8x32xbf16>,
    } else {
    }
    return
  }
  func.func @transform_0(%arg0: i32, %arg1: i32) -> (i32, i32, i32, i32) {
    %c0_i32 = arith.constant 0 : i32
    %c0_i32_0 = arith.constant 0 : i32
    %c0_i32_1 = arith.constant 0 : i32
    return %arg0, %arg1, %c0_i32, %c0_i32_0 : i32, i32, i32, i32
  }
  func.func @transform_1(%arg0: i32, %arg1: i32) -> (i32, i32, i32, i32) {
    %c0_i32 = arith.constant 0 : i32
    %c0_i32_0 = arith.constant 0 : i32
    %c0_i32_1 = arith.constant 0 : i32
    return %arg0, %arg1, %c0_i32, %c0_i32_0 : i32, i32, i32, i32
  }
  func.func @transform_2(%arg0: i32, %arg1: i32) -> (i32, i32, i32, i32) {
    %c0_i32 = arith.constant 0 : i32
    %c0_i32_0 = arith.constant 0 : i32
    %c0_i32_1 = arith.constant 0 : i32
    return %arg0, %arg1, %c0_i32, %c0_i32_0 : i32, i32, i32, i32
  }
  func.func @transform_3(%arg0: i32, %arg1: i32) -> (i32, i32, i32, i32) {
    %c0_i32 = arith.constant 0 : i32
    %c0_i32_0 = arith.constant 0 : i32
    %c0_i32_1 = arith.constant 0 : i32
    return %arg0, %arg1, %c0_i32, %c0_i32_0 : i32, i32, i32, i32
  }
  func.func @transform_4(%arg0: i32, %arg1: i32) -> (i32, i32, i32, i32) {
    %c0_i32 = arith.constant 0 : i32
    %c0_i32_0 = arith.constant 0 : i32
    %c0_i32_1 = arith.constant 0 : i32
    return %arg0, %arg1, %c0_i32, %c0_i32_0 : i32, i32, i32, i32
  }
  func.func @transform_5(%arg0: i32, %arg1: i32) -> (i32, i32, i32) {
    %c0_i32 = arith.constant 0 : i32
    %c0_i32_0 = arith.constant 0 : i32
    %c0_i32_1 = arith.constant 0 : i32
    return %arg1, %c0_i32, %c0_i32_0 : i32, i32, i32
  }
  func.func @transform_6(%arg0: i32, %arg1: i32) -> (i32, i32, i32) {
    %c0_i32 = arith.constant 0 : i32
    %c0_i32_0 = arith.constant 0 : i32
    %c0_i32_1 = arith.constant 0 : i32
    return %arg1, %c0_i32, %c0_i32_0 : i32, i32, i32
  }
  func.func @transform_7(%arg0: i32, %arg1: i32) -> (i32, i32, i32) {
    %c0_i32 = arith.constant 0 : i32
    %c0_i32_0 = arith.constant 0 : i32
    %c0_i32_1 = arith.constant 0 : i32
    return %arg1, %c0_i32, %c0_i32_0 : i32, i32, i32
  }
  func.func @transform_8(%arg0: i32, %arg1: i32) -> (i32, i32, i32) {
    %c0_i32 = arith.constant 0 : i32
    %c0_i32_0 = arith.constant 0 : i32
    %c0_i32_1 = arith.constant 0 : i32
    return %arg1, %c0_i32, %c0_i32_0 : i32, i32, i32
  }
  func.func @transform_9(%arg0: i32, %arg1: i32) -> (i32, i32, i32) {
    %c0_i32 = arith.constant 0 : i32
    %c0_i32_0 = arith.constant 0 : i32
    %c0_i32_1 = arith.constant 0 : i32
    return %arg0, %c0_i32, %c0_i32_0 : i32, i32, i32
  }
}

module attributes {stable_mosaic.version = 11 : i64} {
  func.func @_ln_ff_kernel(%arg0: i32, %arg1: memref<16x32xf32, #tpu.memory_space<vmem>>, %arg2: memref<1x32xf32, #tpu.memory_space<vmem>>, %arg3: memref<1x32xf32, #tpu.memory_space<vmem>>, %arg4: memref<32x64xbf16, #tpu.memory_space<vmem>>, %arg5: memref<1x64xf32, #tpu.memory_space<vmem>>, %arg6: memref<64x32xbf16, #tpu.memory_space<vmem>>, %arg7: memref<1x32xf32, #tpu.memory_space<vmem>>, %arg8: memref<16x32xbf16, #tpu.memory_space<vmem>>) attributes {dimension_semantics = [#tpu.dimension_semantics<parallel>], iteration_bounds = array<i64: 1>, scalar_prefetch = 0 : i64, scratch_operands = 0 : i64, tpu.core_type = #tpu.core_type<tc>, window_params = [{transform_indices = @transform_0, window_bounds = array<i64: 16, 32>}, {pipeline_mode = #tpu.pipeline_mode<synchronous>, transform_indices = @transform_1, window_bounds = array<i64: 1, 32>}, {pipeline_mode = #tpu.pipeline_mode<synchronous>, transform_indices = @transform_2, window_bounds = array<i64: 1, 32>}, {pipeline_mode = #tpu.pipeline_mode<synchronous>, transform_indices = @transform_3, window_bounds = array<i64: 32, 64>}, {pipeline_mode = #tpu.pipeline_mode<synchronous>, transform_indices = @transform_4, window_bounds = array<i64: 1, 64>}, {pipeline_mode = #tpu.pipeline_mode<synchronous>, transform_indices = @transform_5, window_bounds = array<i64: 64, 32>}, {pipeline_mode = #tpu.pipeline_mode<synchronous>, transform_indices = @transform_6, window_bounds = array<i64: 1, 32>}, {transform_indices = @transform_7, window_bounds = array<i64: 16, 32>}]} {
    %c0 = arith.constant 0 : index
    %c0_0 = arith.constant 0 : index
    %0 = vector.load %arg1[%c0, %c0_0] : memref<16x32xf32, #tpu.memory_space<vmem>>, vector<16x32xf32>
    %c0_1 = arith.constant 0 : index
    %c0_2 = arith.constant 0 : index
    %1 = vector.load %arg2[%c0_1, %c0_2] : memref<1x32xf32, #tpu.memory_space<vmem>>, vector<1x32xf32>
    %c0_3 = arith.constant 0 : index
    %c0_4 = arith.constant 0 : index
    %2 = vector.load %arg3[%c0_3, %c0_4] : memref<1x32xf32, #tpu.memory_space<vmem>>, vector<1x32xf32>
    %cst = arith.constant dense<0.000000e+00> : vector<16xf32>
    %3 = vector.multi_reduction <add>, %0, %cst [1] : vector<16x32xf32> to vector<16xf32>
    %4 = vector.shape_cast %3 : vector<16xf32> to vector<16x1xf32>
    %cst_5 = arith.constant 3.200000e+01 : f32
    %5 = vector.broadcast %cst_5 : f32 to vector<16x1xf32>
    %6 = arith.divf %4, %5 : vector<16x1xf32>
    %7 = vector.broadcast %6 : vector<16x1xf32> to vector<16x32xf32>
    %8 = arith.subf %0, %7 : vector<16x32xf32>
    %9 = arith.mulf %8, %8 : vector<16x32xf32>
    %cst_6 = arith.constant dense<0.000000e+00> : vector<16xf32>
    %10 = vector.multi_reduction <add>, %9, %cst_6 [1] : vector<16x32xf32> to vector<16xf32>
    %11 = vector.shape_cast %10 : vector<16xf32> to vector<16x1xf32>
    %cst_7 = arith.constant 3.200000e+01 : f32
    %12 = vector.broadcast %cst_7 : f32 to vector<16x1xf32>
    %13 = arith.divf %11, %12 : vector<16x1xf32>
    %cst_8 = arith.constant 9.99999974E-6 : f32
    %14 = vector.broadcast %cst_8 : f32 to vector<16x1xf32>
    %15 = arith.addf %13, %14 : vector<16x1xf32>
    %16 = math.rsqrt %15 : vector<16x1xf32>
    %17 = vector.broadcast %16 : vector<16x1xf32> to vector<16x32xf32>
    %18 = arith.mulf %8, %17 : vector<16x32xf32>
    %19 = vector.broadcast %1 : vector<1x32xf32> to vector<16x32xf32>
    %20 = arith.mulf %18, %19 : vector<16x32xf32>
    %21 = vector.broadcast %2 : vector<1x32xf32> to vector<16x32xf32>
    %22 = arith.addf %20, %21 : vector<16x32xf32>
    %23 = arith.truncf %22 : vector<16x32xf32> to vector<16x32xbf16>
    %c0_9 = arith.constant 0 : index
    %c0_10 = arith.constant 0 : index
    %24 = vector.load %arg4[%c0_9, %c0_10] : memref<32x64xbf16, #tpu.memory_space<vmem>>, vector<32x64xbf16>
    %cst_11 = arith.constant dense<0.000000e+00> : vector<16x64xf32>
    %25 = tpu.matmul %23, %24, %cst_11 {dimension_numbers = #tpu.dot_dimension_numbers<[1], [0], [0], [1], [0, 0, 1, 1], [], []>} : vector<16x32xbf16>, vector<32x64xbf16>, vector<16x64xf32> -> vector<16x64xf32>
    %c0_12 = arith.constant 0 : index
    %c0_13 = arith.constant 0 : index
    %26 = vector.load %arg5[%c0_12, %c0_13] : memref<1x64xf32, #tpu.memory_space<vmem>>, vector<1x64xf32>
    %27 = vector.broadcast %26 : vector<1x64xf32> to vector<16x64xf32>
    %28 = arith.addf %25, %27 : vector<16x64xf32>
    %cst_14 = arith.constant 0.000000e+00 : f32
    %29 = vector.broadcast %cst_14 : f32 to vector<16x64xf32>
    %30 = arith.maximumf %28, %29 : vector<16x64xf32>
    %31 = arith.truncf %30 : vector<16x64xf32> to vector<16x64xbf16>
    %c0_15 = arith.constant 0 : index
    %c0_16 = arith.constant 0 : index
    %32 = vector.load %arg6[%c0_15, %c0_16] : memref<64x32xbf16, #tpu.memory_space<vmem>>, vector<64x32xbf16>
    %cst_17 = arith.constant dense<0.000000e+00> : vector<16x32xf32>
    %33 = tpu.matmul %31, %32, %cst_17 {dimension_numbers = #tpu.dot_dimension_numbers<[1], [0], [0], [1], [0, 0, 1, 1], [], []>} : vector<16x64xbf16>, vector<64x32xbf16>, vector<16x32xf32> -> vector<16x32xf32>
    %c0_18 = arith.constant 0 : index
    %c0_19 = arith.constant 0 : index
    %34 = vector.load %arg7[%c0_18, %c0_19] : memref<1x32xf32, #tpu.memory_space<vmem>>, vector<1x32xf32>
    %35 = vector.broadcast %34 : vector<1x32xf32> to vector<16x32xf32>
    %36 = arith.addf %33, %35 : vector<16x32xf32>
    %37 = arith.truncf %36 : vector<16x32xf32> to vector<16x32xbf16>
    %c0_20 = arith.constant 0 : index
    %c0_21 = arith.constant 0 : index
    %38 = vector.load %arg8[%c0_20, %c0_21] : memref<16x32xbf16, #tpu.memory_space<vmem>>, vector<16x32xbf16>
    tpu.vector_store %arg8[%c0_20, %c0_21], %37 {strides = array<i32>} : memref<16x32xbf16, #tpu.memory_space<vmem>>, vector<16x32xbf16>,
    return
  }
  func.func @transform_0(%arg0: i32) -> (i32, i32) {
    %c0_i32 = arith.constant 0 : i32
    %c0_i32_0 = arith.constant 0 : i32
    return %arg0, %c0_i32 : i32, i32
  }
  func.func @transform_1(%arg0: i32) -> (i32, i32) {
    %c0_i32 = arith.constant 0 : i32
    %c0_i32_0 = arith.constant 0 : i32
    %c0_i32_1 = arith.constant 0 : i32
    return %c0_i32, %c0_i32_0 : i32, i32
  }
  func.func @transform_2(%arg0: i32) -> (i32, i32) {
    %c0_i32 = arith.constant 0 : i32
    %c0_i32_0 = arith.constant 0 : i32
    %c0_i32_1 = arith.constant 0 : i32
    return %c0_i32, %c0_i32_0 : i32, i32
  }
  func.func @transform_3(%arg0: i32) -> (i32, i32) {
    %c0_i32 = arith.constant 0 : i32
    %c0_i32_0 = arith.constant 0 : i32
    %c0_i32_1 = arith.constant 0 : i32
    return %c0_i32, %c0_i32_0 : i32, i32
  }
  func.func @transform_4(%arg0: i32) -> (i32, i32) {
    %c0_i32 = arith.constant 0 : i32
    %c0_i32_0 = arith.constant 0 : i32
    %c0_i32_1 = arith.constant 0 : i32
    return %c0_i32, %c0_i32_0 : i32, i32
  }
  func.func @transform_5(%arg0: i32) -> (i32, i32) {
    %c0_i32 = arith.constant 0 : i32
    %c0_i32_0 = arith.constant 0 : i32
    %c0_i32_1 = arith.constant 0 : i32
    return %c0_i32, %c0_i32_0 : i32, i32
  }
  func.func @transform_6(%arg0: i32) -> (i32, i32) {
    %c0_i32 = arith.constant 0 : i32
    %c0_i32_0 = arith.constant 0 : i32
    %c0_i32_1 = arith.constant 0 : i32
    return %c0_i32, %c0_i32_0 : i32, i32
  }
  func.func @transform_7(%arg0: i32) -> (i32, i32) {
    %c0_i32 = arith.constant 0 : i32
    %c0_i32_0 = arith.constant 0 : i32
    return %arg0, %c0_i32 : i32, i32
  }
}

module attributes {stable_mosaic.version = 11 : i64} {
  func.func @_gating_kernel(%arg0: i32, %arg1: memref<16x32xf32, #tpu.memory_space<vmem>>, %arg2: memref<16x32xbf16, #tpu.memory_space<vmem>>, %arg3: memref<32x96xbf16, #tpu.memory_space<vmem>>, %arg4: memref<1x96xf32, #tpu.memory_space<vmem>>, %arg5: memref<32x64xbf16, #tpu.memory_space<vmem>>, %arg6: memref<1x64xf32, #tpu.memory_space<vmem>>, %arg7: memref<32x32xbf16, #tpu.memory_space<vmem>>, %arg8: memref<1x32xf32, #tpu.memory_space<vmem>>, %arg9: memref<16x32xf32, #tpu.memory_space<vmem>>) attributes {dimension_semantics = [#tpu.dimension_semantics<parallel>], iteration_bounds = array<i64: 1>, scalar_prefetch = 0 : i64, scratch_operands = 0 : i64, tpu.core_type = #tpu.core_type<tc>, window_params = [{transform_indices = @transform_0, window_bounds = array<i64: 16, 32>}, {transform_indices = @transform_1, window_bounds = array<i64: 16, 32>}, {pipeline_mode = #tpu.pipeline_mode<synchronous>, transform_indices = @transform_2, window_bounds = array<i64: 32, 96>}, {pipeline_mode = #tpu.pipeline_mode<synchronous>, transform_indices = @transform_3, window_bounds = array<i64: 1, 96>}, {pipeline_mode = #tpu.pipeline_mode<synchronous>, transform_indices = @transform_4, window_bounds = array<i64: 32, 64>}, {pipeline_mode = #tpu.pipeline_mode<synchronous>, transform_indices = @transform_5, window_bounds = array<i64: 1, 64>}, {pipeline_mode = #tpu.pipeline_mode<synchronous>, transform_indices = @transform_6, window_bounds = array<i64: 32, 32>}, {pipeline_mode = #tpu.pipeline_mode<synchronous>, transform_indices = @transform_7, window_bounds = array<i64: 1, 32>}, {transform_indices = @transform_8, window_bounds = array<i64: 16, 32>}]} {
    %c0 = arith.constant 0 : index
    %c0_0 = arith.constant 0 : index
    %0 = vector.load %arg1[%c0, %c0_0] : memref<16x32xf32, #tpu.memory_space<vmem>>, vector<16x32xf32>
    %1 = arith.truncf %0 : vector<16x32xf32> to vector<16x32xbf16>
    %c0_1 = arith.constant 0 : index
    %c0_2 = arith.constant 0 : index
    %2 = vector.load %arg2[%c0_1, %c0_2] : memref<16x32xbf16, #tpu.memory_space<vmem>>, vector<16x32xbf16>
    %c0_3 = arith.constant 0 : index
    %c0_4 = arith.constant 0 : index
    %3 = vector.load %arg3[%c0_3, %c0_4] : memref<32x96xbf16, #tpu.memory_space<vmem>>, vector<32x96xbf16>
    %cst = arith.constant dense<0.000000e+00> : vector<16x96xf32>
    %4 = tpu.matmul %2, %3, %cst {dimension_numbers = #tpu.dot_dimension_numbers<[1], [0], [0], [1], [0, 0, 1, 1], [], []>} : vector<16x32xbf16>, vector<32x96xbf16>, vector<16x96xf32> -> vector<16x96xf32>
    %c0_5 = arith.constant 0 : index
    %c0_6 = arith.constant 0 : index
    %5 = vector.load %arg4[%c0_5, %c0_6] : memref<1x96xf32, #tpu.memory_space<vmem>>, vector<1x96xf32>
    %6 = vector.broadcast %5 : vector<1x96xf32> to vector<16x96xf32>
    %7 = arith.addf %4, %6 : vector<16x96xf32>
    %c0_7 = arith.constant 0 : index
    %c0_8 = arith.constant 0 : index
    %8 = vector.load %arg5[%c0_7, %c0_8] : memref<32x64xbf16, #tpu.memory_space<vmem>>, vector<32x64xbf16>
    %cst_9 = arith.constant dense<0.000000e+00> : vector<16x64xf32>
    %9 = tpu.matmul %1, %8, %cst_9 {dimension_numbers = #tpu.dot_dimension_numbers<[1], [0], [0], [1], [0, 0, 1, 1], [], []>} : vector<16x32xbf16>, vector<32x64xbf16>, vector<16x64xf32> -> vector<16x64xf32>
    %c0_10 = arith.constant 0 : index
    %c0_11 = arith.constant 0 : index
    %10 = vector.load %arg6[%c0_10, %c0_11] : memref<1x64xf32, #tpu.memory_space<vmem>>, vector<1x64xf32>
    %11 = vector.broadcast %10 : vector<1x64xf32> to vector<16x64xf32>
    %12 = arith.addf %9, %11 : vector<16x64xf32>
    %13 = vector.extract_strided_slice %7 {offsets = [0, 0], sizes = [16, 32], strides = [1, 1]} : vector<16x96xf32> to vector<16x32xf32>
    %14 = vector.extract_strided_slice %12 {offsets = [0, 0], sizes = [16, 32], strides = [1, 1]} : vector<16x64xf32> to vector<16x32xf32>
    %15 = arith.addf %13, %14 : vector<16x32xf32>
    %cst_12 = arith.constant 0.000000e+00 : f32
    %16 = vector.broadcast %cst_12 : f32 to vector<16x32xf32>
    %17 = arith.subf %16, %15 : vector<16x32xf32>
    %18 = math.exp %17 : vector<16x32xf32>
    %cst_13 = arith.constant 1.000000e+00 : f32
    %19 = vector.broadcast %cst_13 : f32 to vector<16x32xf32>
    %20 = arith.addf %19, %18 : vector<16x32xf32>
    %cst_14 = arith.constant 1.000000e+00 : f32
    %21 = vector.broadcast %cst_14 : f32 to vector<16x32xf32>
    %22 = arith.divf %21, %20 : vector<16x32xf32>
    %23 = vector.extract_strided_slice %7 {offsets = [0, 32], sizes = [16, 32], strides = [1, 1]} : vector<16x96xf32> to vector<16x32xf32>
    %24 = vector.extract_strided_slice %12 {offsets = [0, 32], sizes = [16, 32], strides = [1, 1]} : vector<16x64xf32> to vector<16x32xf32>
    %25 = arith.addf %23, %24 : vector<16x32xf32>
    %cst_15 = arith.constant 1.000000e-01 : f32
    %26 = vector.broadcast %cst_15 : f32 to vector<16x32xf32>
    %27 = arith.subf %25, %26 : vector<16x32xf32>
    %cst_16 = arith.constant 0.000000e+00 : f32
    %28 = vector.broadcast %cst_16 : f32 to vector<16x32xf32>
    %29 = arith.subf %28, %27 : vector<16x32xf32>
    %30 = math.exp %29 : vector<16x32xf32>
    %cst_17 = arith.constant 1.000000e+00 : f32
    %31 = vector.broadcast %cst_17 : f32 to vector<16x32xf32>
    %32 = arith.addf %31, %30 : vector<16x32xf32>
    %cst_18 = arith.constant 1.000000e+00 : f32
    %33 = vector.broadcast %cst_18 : f32 to vector<16x32xf32>
    %34 = arith.divf %33, %32 : vector<16x32xf32>
    %35 = vector.extract_strided_slice %7 {offsets = [0, 64], sizes = [16, 32], strides = [1, 1]} : vector<16x96xf32> to vector<16x32xf32>
    %36 = arith.mulf %22, %0 : vector<16x32xf32>
    %37 = arith.truncf %36 : vector<16x32xf32> to vector<16x32xbf16>
    %c0_19 = arith.constant 0 : index
    %c0_20 = arith.constant 0 : index
    %38 = vector.load %arg7[%c0_19, %c0_20] : memref<32x32xbf16, #tpu.memory_space<vmem>>, vector<32x32xbf16>
    %cst_21 = arith.constant dense<0.000000e+00> : vector<16x32xf32>
    %39 = tpu.matmul %37, %38, %cst_21 {dimension_numbers = #tpu.dot_dimension_numbers<[1], [0], [0], [1], [0, 0, 1, 1], [], []>} : vector<16x32xbf16>, vector<32x32xbf16>, vector<16x32xf32> -> vector<16x32xf32>
    %40 = arith.addf %35, %39 : vector<16x32xf32>
    %c0_22 = arith.constant 0 : index
    %c0_23 = arith.constant 0 : index
    %41 = vector.load %arg8[%c0_22, %c0_23] : memref<1x32xf32, #tpu.memory_space<vmem>>, vector<1x32xf32>
    %42 = vector.broadcast %41 : vector<1x32xf32> to vector<16x32xf32>
    %43 = arith.addf %40, %42 : vector<16x32xf32>
    %44 = math.tanh %43 : vector<16x32xf32>
    %cst_24 = arith.constant 1.000000e+00 : f32
    %45 = vector.broadcast %cst_24 : f32 to vector<16x32xf32>
    %46 = arith.subf %45, %34 : vector<16x32xf32>
    %47 = arith.mulf %46, %0 : vector<16x32xf32>
    %48 = arith.mulf %34, %44 : vector<16x32xf32>
    %49 = arith.addf %47, %48 : vector<16x32xf32>
    %c0_25 = arith.constant 0 : index
    %c0_26 = arith.constant 0 : index
    %50 = vector.load %arg9[%c0_25, %c0_26] : memref<16x32xf32, #tpu.memory_space<vmem>>, vector<16x32xf32>
    tpu.vector_store %arg9[%c0_25, %c0_26], %49 {strides = array<i32>} : memref<16x32xf32, #tpu.memory_space<vmem>>, vector<16x32xf32>,
    return
  }
  func.func @transform_0(%arg0: i32) -> (i32, i32) {
    %c0_i32 = arith.constant 0 : i32
    %c0_i32_0 = arith.constant 0 : i32
    return %arg0, %c0_i32 : i32, i32
  }
  func.func @transform_1(%arg0: i32) -> (i32, i32) {
    %c0_i32 = arith.constant 0 : i32
    %c0_i32_0 = arith.constant 0 : i32
    return %arg0, %c0_i32 : i32, i32
  }
  func.func @transform_2(%arg0: i32) -> (i32, i32) {
    %c0_i32 = arith.constant 0 : i32
    %c0_i32_0 = arith.constant 0 : i32
    %c0_i32_1 = arith.constant 0 : i32
    return %c0_i32, %c0_i32_0 : i32, i32
  }
  func.func @transform_3(%arg0: i32) -> (i32, i32) {
    %c0_i32 = arith.constant 0 : i32
    %c0_i32_0 = arith.constant 0 : i32
    %c0_i32_1 = arith.constant 0 : i32
    return %c0_i32, %c0_i32_0 : i32, i32
  }
  func.func @transform_4(%arg0: i32) -> (i32, i32) {
    %c0_i32 = arith.constant 0 : i32
    %c0_i32_0 = arith.constant 0 : i32
    %c0_i32_1 = arith.constant 0 : i32
    return %c0_i32, %c0_i32_0 : i32, i32
  }
  func.func @transform_5(%arg0: i32) -> (i32, i32) {
    %c0_i32 = arith.constant 0 : i32
    %c0_i32_0 = arith.constant 0 : i32
    %c0_i32_1 = arith.constant 0 : i32
    return %c0_i32, %c0_i32_0 : i32, i32
  }
  func.func @transform_6(%arg0: i32) -> (i32, i32) {
    %c0_i32 = arith.constant 0 : i32
    %c0_i32_0 = arith.constant 0 : i32
    %c0_i32_1 = arith.constant 0 : i32
    return %c0_i32, %c0_i32_0 : i32, i32
  }
  func.func @transform_7(%arg0: i32) -> (i32, i32) {
    %c0_i32 = arith.constant 0 : i32
    %c0_i32_0 = arith.constant 0 : i32
    %c0_i32_1 = arith.constant 0 : i32
    return %c0_i32, %c0_i32_0 : i32, i32
  }
  func.func @transform_8(%arg0: i32) -> (i32, i32) {
    %c0_i32 = arith.constant 0 : i32
    %c0_i32_0 = arith.constant 0 : i32
    return %arg0, %c0_i32 : i32, i32
  }
}

</mosaic_0001>

<bundles_post_ra>
// kernel: stable_transformer_xl_forward.15
= control target key start
LH: loop header
LB: loop body
LE: loop exit
PB: predicated region body
PF: predicated region fallthrough
CT: control target
= control target key end

     0   :  { %vm31_vm0 = vcmask 261120   ;;  %vm51_vm1 = vcmask 519168   ;;  %s102_s1 = inlined_call_operand.vmem [shape: bf16[32,64], index: 1, kind: input, shape index: {}]   ;;  %s103_s0 = inlined_call_operand.vmem [shape: f32[16,32], index: 0, kind: input, shape index: {}]   ;;  %s104_s2 = inlined_call_operand.vmem [shape: bf16[16,64], index: 2, kind: output, shape index: {}]  }
   0x1   :  { %v68_v0 = vld [vmem:[%s102_s1 + $0x8] sm:$0xff]  ;;  %v67_v1 = vld [vmem:[%s102_s1] sm:$0xff] }
   0x2   :  { %41 = vmatpush.bf16.msra.mxu0 %v68_v0  ;;  %v12_v2 = vld [vmem:[%s103_s0] sm:$0xff]  ;;  %v13_v3 = vld [vmem:[%s103_s0 + $0x8] sm:$0xff] }
   0x3   :  { %v14_v4 = vpack.c.bf16 %v13_v3, %v12_v2 }
   0x6   :  { %42 = vmatpush.bf16.msra.mxu0 %v67_v1 }
   0x9   :  { %66 = vmatmul.msk.bf16.vlgmr.msra.gmra.mxu0 %vm31_vm0, %v14_v4 }
  0x86   :  { %v44_v5 = vpop.f32.mrf.mxu0 }
  0x87   :  { %v49_v6 = vpack.c.bf16 %v44_v5, %v44_v5 }
  0x89   :  { %52 = vst.msk [vmem:[%s104_s2] sm:$0xf] %vm51_vm1, %v49_v6 }
  0x8e   :  { %v46_v7 = vpop.f32.mrf.mxu0 }
  0x8f   :  { %v50_v8 = vpack.c.bf16 %v46_v7, %v46_v7 }
  0x91   :  { %53 = vst.msk [vmem:[%s104_s2 + $0x4] sm:$0xf] %vm51_vm1, %v50_v8 }

// kernel: stable_transformer_xl_forward.14
= control target key start
LH: loop header
LB: loop body
LE: loop exit
PB: predicated region body
PF: predicated region fallthrough
CT: control target
= control target key end

     0   :  { %vm22_vm0 = vcmask 261120   ;;  %v147_v4 = vmov 32.0   ;;  %vm120_vm8 = vcmask 781312   ;;  %s202_s0 = inlined_call_operand.vmem [shape: f32[16,32], index: 0, kind: input, shape index: {}]   ;;  %s203_s1 = inlined_call_operand.vmem [shape: f32[1,32], index: 1, kind: input, shape index: {}]   ;;  %s204_s2 = inlined_call_operand.vmem [shape: f32[1,32], index: 2, kind: input, shape index: {}]   ;;  %s205_s3 = inlined_call_operand.vmem [shape: bf16[32,96], index: 3, kind: input, shape index: {}]   ;;  %s206_s4 = inlined_call_operand.vmem [shape: bf16[16,96], index: 4, kind: output, shape index: {}]  }
   0x1   :  { %v18_v0 = vld [vmem:[%s202_s0] sm:$0xff]  ;;  %v19_v2 = vld [vmem:[%s202_s0 + $0x8] sm:$0xff]  ;;  %141 = vrcp.f32 %v147_v4 }
   0x2   :  { %v23_v1 = vsel %vm22_vm0, %v18_v0, 0.0  ;;  %v26_v3 = vsel %vm22_vm0, %v19_v2, 0.0  ;;  %v137_v21 = vld [vmem:[%s205_s3 + $0x8] sm:$0xff]  ;;  %v136_v23 = vld [vmem:[%s205_s3] sm:$0xff] }
   0x3   :  { %24 = vadd.xlane.f32.xlu0 %v23_v1  ;;  %110 = vmatpush.bf16.msra.mxu0 %v137_v21  ;;  %v139_v42 = vld [vmem:[%s203_s1] ss:$0 sm:$0xff] }
   0x4   :  { %v140_v47 = vld [vmem:[%s204_s2] ss:$0 sm:$0xff] }
   0x7   :  { %v142_v5 = vpop.eup %141  ;;  %111 = vmatpush.bf16.msra.mxu0 %v136_v23 }
   0x8   :  { %v30_v6 = vmul.f32 32.0, %v142_v5  ;;  %vm34_vm1 = vweird.f32 %v142_v5 }
   0xa   :  { %v31_v7 = vsub.f32 1.0, %v30_v6 }
   0xb   :  { %27 = vadd.xlane.f32.xlu0 %v26_v3 }
   0xc   :  { %v32_v8 = vmul.f32 %v142_v5, %v31_v7 }
   0xe   :  { %v33_v9 = vadd.f32 %v142_v5, %v32_v8 }
  0x10   :  { %v35_v10 = vsel %vm34_vm1, %v142_v5, %v33_v9 }
  0x76   :  { %v25_v11 = vpop.xlane.xlu0 %24 }
  0x77   :  { %v36_v12 = vmul.f32 %v35_v10, %v25_v11 }
  0x79   :  { %v38_v13 = vsub.f32 %v18_v0, %v36_v12 }
  0x7b   :  { %v40_v14 = vmul.f32 %v38_v13, %v38_v13 }
  0x7d   :  { %v42_v15 = vsel %vm22_vm0, %v40_v14, 0.0 }
  0x7e   :  { %43 = vadd.xlane.f32.xlu1 %v42_v15  ;;  %v28_v16 = vpop.xlane.xlu0 %27 }
  0x7f   :  { %v37_v17 = vmul.f32 %v35_v10, %v28_v16 }
  0x81   :  { %v39_v18 = vsub.f32 %v19_v2, %v37_v17 }
  0x83   :  { %v41_v19 = vmul.f32 %v39_v18, %v39_v18 }
  0x85   :  { %v45_v20 = vsel %vm22_vm0, %v41_v19, 0.0 }
  0x86   :  { %46 = vadd.xlane.f32.xlu1 %v45_v20 }
  0xf1   :  { %v44_v22 = vpop.xlane.xlu1 %43 }
  0xf2   :  { %v48_v24 = vmul.f32 %v44_v22, %v35_v10 }
  0xf4   :  { %v50_v25 = vadd.f32 1e-05, %v48_v24 }
  0xf6   :  { %143 = vrsqrt.f32 %v50_v25  ;;  %vm58_vm3 = vweird.f32 %v50_v25 }
  0xf9   :  { %v47_v26 = vpop.xlane.xlu1 %46 }
  0xfa   :  { %v49_v27 = vmul.f32 %v47_v26, %v35_v10 }
  0xfc   :  { %v144_v28 = vpop.eup %143  ;;  %v51_v29 = vadd.f32 1e-05, %v49_v27 }
  0xfd   :  { %v53_v30 = vmul.f32 %v144_v28, %v50_v25  ;;  %vm59_vm2 = vweird.f32 %v144_v28 }
  0xfe   :  { %145 = vrsqrt.f32 %v51_v29  ;;  %vm60_vm4 = vmor %vm58_vm3, %vm59_vm2  ;;  %vm68_vm6 = vweird.f32 %v51_v29 }
  0xff   :  { %v54_v31 = vmul.f32 %v144_v28, %v53_v30 }
 0x101   :  { %v55_v32 = vmul.f32 0.5, %v54_v31 }
 0x103   :  { %v56_v33 = vsub.f32 1.5, %v55_v32 }
 0x104   :  { %v146_v34 = vpop.eup %145 }
 0x105   :  { %v57_v35 = vmul.f32 %v144_v28, %v56_v33  ;;  %v63_v36 = vmul.f32 %v146_v34, %v51_v29  ;;  %vm69_vm5 = vweird.f32 %v146_v34 }
 0x106   :  { %vm70_vm7 = vmor %vm68_vm6, %vm69_vm5 }
 0x107   :  { %v64_v37 = vmul.f32 %v146_v34, %v63_v36  ;;  %v61_v38 = vsel %vm60_vm4, %v144_v28, %v57_v35 }
 0x108   :  { %v72_v41 = vmul.f32 %v61_v38, %v38_v13 }
 0x109   :  { %v65_v39 = vmul.f32 0.5, %v64_v37 }
 0x10a   :  { %v77_v46 = vmul.f32 %v139_v42, %v72_v41 }
 0x10b   :  { %v66_v40 = vsub.f32 1.5, %v65_v39 }
 0x10c   :  { %v82_v49 = vadd.f32 %v140_v47, %v77_v46 }
 0x10d   :  { %v67_v43 = vmul.f32 %v146_v34, %v66_v40 }
 0x10f   :  { %v71_v44 = vsel %vm70_vm7, %v146_v34, %v67_v43 }
 0x110   :  { %v73_v45 = vmul.f32 %v71_v44, %v39_v18 }
 0x112   :  { %v78_v48 = vmul.f32 %v139_v42, %v73_v45 }
 0x114   :  { %v83_v50 = vadd.f32 %v140_v47, %v78_v48 }
 0x116   :  { %v84_v51 = vpack.c.bf16 %v83_v50, %v82_v49 }
 0x118   :  { %135 = vmatmul.msk.bf16.vlgmr.msra.gmra.mxu0 %vm22_vm0, %v84_v51 }
 0x195   :  { %v113_v52 = vpop.f32.mrf.mxu0 }
 0x196   :  { %v118_v53 = vpack.c.bf16 %v113_v52, %v113_v52 }
 0x198   :  { %121 = vst.msk [vmem:[%s206_s4] sm:$0xf] %vm120_vm8, %v118_v53 }
 0x19d   :  { %v115_v54 = vpop.f32.mrf.mxu0 }
 0x19e   :  { %v119_v55 = vpack.c.bf16 %v115_v54, %v115_v54 }
 0x1a0   :  { %122 = vst.msk [vmem:[%s206_s4 + $0x4] sm:$0xf] %vm120_vm8, %v119_v55 }

// kernel: stable_transformer_xl_forward.16
= control target key start
LH: loop header
LB: loop body
LE: loop exit
PB: predicated region body
PF: predicated region fallthrough
CT: control target
= control target key end

     0   :  { %vm52_vm0 = vcmask 261120   ;;  %vm142_vm1 = vcmask 257024   ;;  %s328_s1 = inlined_call_operand.vmem [shape: bf16[32,32], index: 1, kind: input, shape index: {}]   ;;  %s329_s0 = inlined_call_operand.vmem [shape: f32[128,32], index: 0, kind: input, shape index: {}]   ;;  %s330_s2 = inlined_call_operand.vmem [shape: bf16[128,32], index: 2, kind: output, shape index: {}]  }
   0x1   :  { %v180_v0 = vld [vmem:[%s328_s1 + $0x8] sm:$0xff]  ;;  %v179_v1 = vld [vmem:[%s328_s1] sm:$0xff]  ;;  %v14_v14 = vld [vmem:[%s329_s0 + $0x10] sm:$0xff] }
   0x2   :  { %v12_v2 = vld [vmem:[%s329_s0] sm:$0xff]  ;;  %v13_v3 = vld [vmem:[%s329_s0 + $0x8] sm:$0xff]  ;;  %83 = vmatpush.bf16.msra.mxu0 %v180_v0  ;;  %181 = vmatpush.bf16.msra.mxu1 %v180_v0  ;;  %v15_v15 = vld [vmem:[%s329_s0 + $0x18] sm:$0xff] }
   0x3   :  { %v16_v4 = vld [vmem:[%s329_s0 + $0x20] sm:$0xff]  ;;  %v17_v5 = vld [vmem:[%s329_s0 + $0x28] sm:$0xff]  ;;  %182 = vmatpush.bf16.msra.mxu2 %v180_v0  ;;  %183 = vmatpush.bf16.msra.mxu3 %v180_v0  ;;  %v28_v10 = vpack.c.bf16 %v13_v3, %v12_v2  ;;  %v18_v16 = vld [vmem:[%s329_s0 + $0x30] sm:$0xff]  ;;  %v29_v22 = vpack.c.bf16 %v15_v15, %v14_v14 }
   0x4   :  { %v20_v6 = vld [vmem:[%s329_s0 + $0x40] sm:$0xff]  ;;  %v21_v7 = vld [vmem:[%s329_s0 + $0x48] sm:$0xff]  ;;  %v30_v11 = vpack.c.bf16 %v17_v5, %v16_v4  ;;  %v19_v17 = vld [vmem:[%s329_s0 + $0x38] sm:$0xff] }
   0x5   :  { %v24_v8 = vld [vmem:[%s329_s0 + $0x60] sm:$0xff]  ;;  %v25_v9 = vld [vmem:[%s329_s0 + $0x68] sm:$0xff]  ;;  %v32_v12 = vpack.c.bf16 %v21_v7, %v20_v6  ;;  %v22_v18 = vld [vmem:[%s329_s0 + $0x50] sm:$0xff]  ;;  %v31_v23 = vpack.c.bf16 %v19_v17, %v18_v16 }
   0x6   :  { %84 = vmatpush.bf16.msra.mxu0 %v179_v1  ;;  %184 = vmatpush.bf16.msra.mxu1 %v179_v1  ;;  %v34_v13 = vpack.c.bf16 %v25_v9, %v24_v8  ;;  %v23_v19 = vld [vmem:[%s329_s0 + $0x58] sm:$0xff]  ;;  %v26_v20 = vld [vmem:[%s329_s0 + $0x70] sm:$0xff] }
   0x7   :  { %185 = vmatpush.bf16.msra.mxu2 %v179_v1  ;;  %186 = vmatpush.bf16.msra.mxu3 %v179_v1  ;;  %v27_v21 = vld [vmem:[%s329_s0 + $0x78] sm:$0xff]  ;;  %v33_v24 = vpack.c.bf16 %v23_v19, %v22_v18 }
   0x8   :  { %v35_v25 = vpack.c.bf16 %v27_v21, %v26_v20 }
   0x9   :  { %171 = vmatmul.msk.bf16.vlgmr.msra.gmra.mxu0 %vm52_vm0, %v28_v10  ;;  %173 = vmatmul.msk.bf16.vlgmr.msra.gmra.mxu1 %vm52_vm0, %v30_v11 }
   0xa   :  { %175 = vmatmul.msk.bf16.vlgmr.msra.gmra.mxu2 %vm52_vm0, %v32_v12  ;;  %177 = vmatmul.msk.bf16.vlgmr.msra.gmra.mxu3 %vm52_vm0, %v34_v13 }
  0x19   :  { %172 = vmatmul.msk.bf16.gmra.mxu0 %vm52_vm0, %v29_v22  ;;  %174 = vmatmul.msk.bf16.gmra.mxu1 %vm52_vm0, %v31_v23 }
  0x1a   :  { %176 = vmatmul.msk.bf16.gmra.mxu2 %vm52_vm0, %v33_v24  ;;  %178 = vmatmul.msk.bf16.gmra.mxu3 %vm52_vm0, %v35_v25 }
  0x86   :  { %v86_v26 = vpop.f32.mrf.mxu0  ;;  %v96_v27 = vpop.f32.mrf.mxu1 }
  0x87   :  { %v126_v28 = vpack.c.bf16 %v86_v26, %v86_v26  ;;  %v130_v29 = vpack.c.bf16 %v96_v27, %v96_v27 }
  0x89   :  { %143 = vst.msk [vmem:[%s330_s2] sm:$0xf] %vm142_vm1, %v126_v28 }
  0x8a   :  { %147 = vst.msk [vmem:[%s330_s2 + $0x10] sm:$0xf] %vm142_vm1, %v130_v29 }
  0x8d   :  { %v106_v30 = vpop.f32.mrf.mxu2  ;;  %v116_v31 = vpop.f32.mrf.mxu3 }
  0x8e   :  { %v134_v32 = vpack.c.bf16 %v106_v30, %v106_v30  ;;  %v138_v33 = vpack.c.bf16 %v116_v31, %v116_v31  ;;  %v88_v34 = vpop.f32.mrf.mxu0  ;;  %v98_v35 = vpop.f32.mrf.mxu1 }
  0x8f   :  { %v127_v36 = vpack.c.bf16 %v88_v34, %v88_v34  ;;  %v131_v37 = vpack.c.bf16 %v98_v35, %v98_v35 }
  0x90   :  { %151 = vst.msk [vmem:[%s330_s2 + $0x20] sm:$0xf] %vm142_vm1, %v134_v32 }
  0x91   :  { %155 = vst.msk [vmem:[%s330_s2 + $0x30] sm:$0xf] %vm142_vm1, %v138_v33 }
  0x92   :  { %144 = vst.msk [vmem:[%s330_s2 + $0x4] sm:$0xf] %vm142_vm1, %v127_v36 }
  0x93   :  { %148 = vst.msk [vmem:[%s330_s2 + $0x14] sm:$0xf] %vm142_vm1, %v131_v37 }
  0x95   :  { %v108_v38 = vpop.f32.mrf.mxu2  ;;  %v118_v39 = vpop.f32.mrf.mxu3 }
  0x96   :  { %v135_v40 = vpack.c.bf16 %v108_v38, %v108_v38  ;;  %v139_v41 = vpack.c.bf16 %v118_v39, %v118_v39  ;;  %v91_v42 = vpop.f32.mrf.mxu0  ;;  %v101_v43 = vpop.f32.mrf.mxu1 }
  0x97   :  { %v128_v44 = vpack.c.bf16 %v91_v42, %v91_v42  ;;  %v132_v45 = vpack.c.bf16 %v101_v43, %v101_v43 }
  0x98   :  { %152 = vst.msk [vmem:[%s330_s2 + $0x24] sm:$0xf] %vm142_vm1, %v135_v40 }
  0x99   :  { %156 = vst.msk [vmem:[%s330_s2 + $0x34] sm:$0xf] %vm142_vm1, %v139_v41 }
  0x9a   :  { %145 = vst.msk [vmem:[%s330_s2 + $0x8] sm:$0xf] %vm142_vm1, %v128_v44 }
  0x9b   :  { %149 = vst.msk [vmem:[%s330_s2 + $0x18] sm:$0xf] %vm142_vm1, %v132_v45 }
  0x9d   :  { %v111_v46 = vpop.f32.mrf.mxu2  ;;  %v121_v47 = vpop.f32.mrf.mxu3 }
  0x9e   :  { %v136_v48 = vpack.c.bf16 %v111_v46, %v111_v46  ;;  %v140_v49 = vpack.c.bf16 %v121_v47, %v121_v47  ;;  %v93_v50 = vpop.f32.mrf.mxu0  ;;  %v103_v51 = vpop.f32.mrf.mxu1 }
  0x9f   :  { %v129_v52 = vpack.c.bf16 %v93_v50, %v93_v50  ;;  %v133_v53 = vpack.c.bf16 %v103_v51, %v103_v51 }
  0xa0   :  { %153 = vst.msk [vmem:[%s330_s2 + $0x28] sm:$0xf] %vm142_vm1, %v136_v48 }
  0xa1   :  { %157 = vst.msk [vmem:[%s330_s2 + $0x38] sm:$0xf] %vm142_vm1, %v140_v49 }
  0xa2   :  { %146 = vst.msk [vmem:[%s330_s2 + $0xc] sm:$0xf] %vm142_vm1, %v129_v52 }
  0xa3   :  { %150 = vst.msk [vmem:[%s330_s2 + $0x1c] sm:$0xf] %vm142_vm1, %v133_v53 }
  0xa5   :  { %v113_v54 = vpop.f32.mrf.mxu2  ;;  %v123_v55 = vpop.f32.mrf.mxu3 }
  0xa6   :  { %v137_v56 = vpack.c.bf16 %v113_v54, %v113_v54  ;;  %v141_v57 = vpack.c.bf16 %v123_v55, %v123_v55 }
  0xa8   :  { %154 = vst.msk [vmem:[%s330_s2 + $0x2c] sm:$0xf] %vm142_vm1, %v137_v56 }
  0xa9   :  { %158 = vst.msk [vmem:[%s330_s2 + $0x3c] sm:$0xf] %vm142_vm1, %v141_v57 }

// kernel: stable_transformer_xl_forward.19
= control target key start
LH: loop header
LB: loop body
LE: loop exit
PB: predicated region body
PF: predicated region fallthrough
CT: control target
= control target key end

     0   :  { %vm31_vm0 = vcmask 261120   ;;  %v240_v4 = vmov 32.0   ;;  %vm170_vm8 = vcmask 523264   ;;  %vm190_vm9 = vcmask 257024   ;;  %s328_s0 = inlined_call_operand.vmem [shape: f32[16,32], index: 0, kind: input, shape index: {}]   ;;  %s329_s1 = inlined_call_operand.vmem [shape: f32[1,32], index: 1, kind: input, shape index: {}]   ;;  %s330_s2 = inlined_call_operand.vmem [shape: f32[1,32], index: 2, kind: input, shape index: {}]   ;;  %s331_s4 = inlined_call_operand.vmem [shape: f32[1,64], index: 4, kind: input, shape index: {}]   ;;  %s332_s3 = inlined_call_operand.vmem [shape: bf16[32,64], index: 3, kind: input, shape index: {}]   ;;  %s333_s6 = inlined_call_operand.vmem [shape: f32[1,32], index: 6, kind: input, shape index: {}]   ;;  %s334_s5 = inlined_call_operand.vmem [shape: bf16[64,32], index: 5, kind: input, shape index: {}]   ;;  %s335_s7 = inlined_call_operand.vmem [shape: bf16[16,32], index: 7, kind: output, shape index: {}]  }
   0x1   :  { %v27_v0 = vld [vmem:[%s328_s0] sm:$0xff]  ;;  %v28_v2 = vld [vmem:[%s328_s0 + $0x8] sm:$0xff]  ;;  %234 = vrcp.f32 %v240_v4  ;;  %v228_v52 = vld [vmem:[%s334_s5 + $0x18] sm:$0xff] }
   0x2   :  { %v32_v1 = vsel %vm31_vm0, %v27_v0, 0.0  ;;  %v35_v3 = vsel %vm31_vm0, %v28_v2, 0.0  ;;  %v224_v21 = vld [vmem:[%s332_s3 + $0x8] sm:$0xff]  ;;  %v223_v23 = vld [vmem:[%s332_s3] sm:$0xff]  ;;  %178 = vmatpush.bf16.msra.mxu1 %v228_v52  ;;  %v227_v53 = vld [vmem:[%s334_s5 + $0x10] sm:$0xff] }
   0x3   :  { %33 = vadd.xlane.f32.xlu0 %v32_v1  ;;  %123 = vmatpush.bf16.msra.mxu0 %v224_v21  ;;  %v230_v42 = vld [vmem:[%s329_s1] ss:$0 sm:$0xff]  ;;  %v226_v54 = vld [vmem:[%s334_s5 + $0x8] sm:$0xff] }
   0x4   :  { %v231_v47 = vld [vmem:[%s330_s2] ss:$0 sm:$0xff] }
   0x5   :  { %v225_v55 = vld [vmem:[%s334_s5] sm:$0xff] }
   0x6   :  { %179 = vmatpush.bf16.msra.mxu1 %v227_v53  ;;  %v232_v57 = vld [vmem:[%s331_s4] ss:$0 sm:$0xff] }
   0x7   :  { %v235_v5 = vpop.eup %234  ;;  %124 = vmatpush.bf16.msra.mxu0 %v223_v23 }
   0x8   :  { %v39_v6 = vmul.f32 32.0, %v235_v5  ;;  %vm43_vm1 = vweird.f32 %v235_v5 }
   0xa   :  { %v40_v7 = vsub.f32 1.0, %v39_v6  ;;  %180 = vmatpush.bf16.msra.mxu1 %v226_v54 }
   0xb   :  { %36 = vadd.xlane.f32.xlu0 %v35_v3 }
   0xc   :  { %v41_v8 = vmul.f32 %v235_v5, %v40_v7 }
   0xe   :  { %v42_v9 = vadd.f32 %v235_v5, %v41_v8  ;;  %181 = vmatpush.bf16.msra.mxu1 %v225_v55 }
  0x10   :  { %v44_v10 = vsel %vm43_vm1, %v235_v5, %v42_v9 }
  0x76   :  { %v34_v11 = vpop.xlane.xlu0 %33 }
  0x77   :  { %v45_v12 = vmul.f32 %v44_v10, %v34_v11 }
  0x79   :  { %v47_v13 = vsub.f32 %v27_v0, %v45_v12  ;;  %v233_v0 = vld [vmem:[%s333_s6] ss:$0 sm:$0xff] }
  0x7b   :  { %v49_v14 = vmul.f32 %v47_v13, %v47_v13 }
  0x7d   :  { %v51_v15 = vsel %vm31_vm0, %v49_v14, 0.0 }
  0x7e   :  { %52 = vadd.xlane.f32.xlu1 %v51_v15  ;;  %v37_v16 = vpop.xlane.xlu0 %36 }
  0x7f   :  { %v46_v17 = vmul.f32 %v44_v10, %v37_v16 }
  0x81   :  { %v48_v18 = vsub.f32 %v28_v2, %v46_v17 }
  0x83   :  { %v50_v19 = vmul.f32 %v48_v18, %v48_v18 }
  0x85   :  { %v54_v20 = vsel %vm31_vm0, %v50_v19, 0.0 }
  0x86   :  { %55 = vadd.xlane.f32.xlu1 %v54_v20 }
  0xf1   :  { %v53_v22 = vpop.xlane.xlu1 %52 }
  0xf2   :  { %v57_v24 = vmul.f32 %v53_v22, %v44_v10 }
  0xf4   :  { %v59_v25 = vadd.f32 1e-05, %v57_v24 }
  0xf6   :  { %236 = vrsqrt.f32 %v59_v25  ;;  %vm67_vm3 = vweird.f32 %v59_v25 }
  0xf9   :  { %v56_v26 = vpop.xlane.xlu1 %55 }
  0xfa   :  { %v58_v27 = vmul.f32 %v56_v26, %v44_v10 }
  0xfc   :  { %v237_v28 = vpop.eup %236  ;;  %v60_v29 = vadd.f32 1e-05, %v58_v27 }
  0xfd   :  { %v62_v30 = vmul.f32 %v237_v28, %v59_v25  ;;  %vm68_vm2 = vweird.f32 %v237_v28 }
  0xfe   :  { %238 = vrsqrt.f32 %v60_v29  ;;  %vm69_vm4 = vmor %vm67_vm3, %vm68_vm2  ;;  %vm77_vm6 = vweird.f32 %v60_v29 }
  0xff   :  { %v63_v31 = vmul.f32 %v237_v28, %v62_v30 }
 0x101   :  { %v64_v32 = vmul.f32 0.5, %v63_v31 }
 0x103   :  { %v65_v33 = vsub.f32 1.5, %v64_v32 }
 0x104   :  { %v239_v34 = vpop.eup %238 }
 0x105   :  { %v66_v35 = vmul.f32 %v237_v28, %v65_v33  ;;  %v72_v36 = vmul.f32 %v239_v34, %v60_v29  ;;  %vm78_vm5 = vweird.f32 %v239_v34 }
 0x106   :  { %vm79_vm7 = vmor %vm77_vm6, %vm78_vm5 }
 0x107   :  { %v73_v37 = vmul.f32 %v239_v34, %v72_v36  ;;  %v70_v38 = vsel %vm69_vm4, %v237_v28, %v66_v35 }
 0x108   :  { %v81_v41 = vmul.f32 %v70_v38, %v47_v13 }
 0x109   :  { %v74_v39 = vmul.f32 0.5, %v73_v37 }
 0x10a   :  { %v86_v46 = vmul.f32 %v230_v42, %v81_v41 }
 0x10b   :  { %v75_v40 = vsub.f32 1.5, %v74_v39 }
 0x10c   :  { %v91_v49 = vadd.f32 %v231_v47, %v86_v46 }
 0x10d   :  { %v76_v43 = vmul.f32 %v239_v34, %v75_v40 }
 0x10f   :  { %v80_v44 = vsel %vm79_vm7, %v239_v34, %v76_v43 }
 0x110   :  { %v82_v45 = vmul.f32 %v80_v44, %v48_v18 }
 0x112   :  { %v87_v48 = vmul.f32 %v230_v42, %v82_v45 }
 0x114   :  { %v92_v50 = vadd.f32 %v231_v47, %v87_v48 }
 0x116   :  { %v93_v51 = vpack.c.bf16 %v92_v50, %v91_v49 }
 0x118   :  { %205 = vmatmul.msk.bf16.vlgmr.msra.gmra.mxu0 %vm31_vm0, %v93_v51 }
 0x195   :  { %v126_v56 = vpop.f32.mrf.mxu0 }
 0x196   :  { %v127_v58 = vadd.f32 %v232_v57, %v126_v56 }
 0x198   :  { %v131_v61 = vmax.f32 %v127_v58, 0.0 }
 0x19d   :  { %v128_v59 = vpop.f32.mrf.mxu0 }
 0x19e   :  { %v129_v60 = vadd.f32 %v232_v57, %v128_v59 }
 0x1a0   :  { %v132_v62 = vmax.f32 %v129_v60, 0.0 }
 0x1a2   :  { %v133_v63 = vpack.c.bf16 %v132_v62, %v131_v61 }
 0x1a4   :  { %222 = vmatmul.msk.bf16.vlgmr.msra.gmra.mxu1 %vm170_vm8, %v133_v63 }
 0x221   :  { %v183_v1 = vpop.f32.mrf.mxu1 }
 0x222   :  { %v184_v2 = vadd.f32 %v233_v0, %v183_v1 }
 0x224   :  { %v188_v3 = vpack.c.bf16 %v184_v2, %v184_v2 }
 0x226   :  { %191 = vst.msk [vmem:[%s335_s7] sm:$0xf] %vm190_vm9, %v188_v3 }
 0x229   :  { %v185_v4 = vpop.f32.mrf.mxu1 }
 0x22a   :  { %v186_v5 = vadd.f32 %v233_v0, %v185_v4 }
 0x22c   :  { %v189_v6 = vpack.c.bf16 %v186_v5, %v186_v5 }
 0x22e   :  { %192 = vst.msk [vmem:[%s335_s7 + $0x4] sm:$0xf] %vm190_vm9, %v189_v6 }

// kernel: stable_transformer_xl_forward.18
= control target key start
LH: loop header
LB: loop body
LE: loop exit
PB: predicated region body
PF: predicated region fallthrough
CT: control target
= control target key end

     0   :  { %vm60_vm0 = vcmask 261120   ;;  %s475_s2 = inlined_call_operand.vmem [shape: bf16[32,96], index: 2, kind: input, shape index: {}]   ;;  %s476_s4 = inlined_call_operand.vmem [shape: bf16[32,64], index: 4, kind: input, shape index: {}]   ;;  %s477_s0 = inlined_call_operand.vmem [shape: f32[16,32], index: 0, kind: input, shape index: {}]   ;;  %s478_s7 = inlined_call_operand.vmem [shape: f32[1,32], index: 7, kind: input, shape index: {}]   ;;  %s479_s1 = inlined_call_operand.vmem [shape: bf16[16,32], index: 1, kind: input, shape index: {}]   ;;  %s480_s3 = inlined_call_operand.vmem [shape: f32[1,96], index: 3, kind: input, shape index: {}]   ;;  %s481_s5 = inlined_call_operand.vmem [shape: f32[1,64], index: 5, kind: input, shape index: {}]   ;;  %s482_s6 = inlined_call_operand.vmem [shape: bf16[32,32], index: 6, kind: input, shape index: {}]   ;;  %s483_s8 = inlined_call_operand.vmem [shape: f32[16,32], index: 8, kind: output, shape index: {}]  }
   0x1   :  { %v324_v0 = vld [vmem:[%s475_s2 + $0x8] sm:$0xff]  ;;  %v323_v2 = vld [vmem:[%s475_s2] sm:$0xff]  ;;  %s355_s2 = smov 32  }
   0x2   :  { %v326_v1 = vld [vmem:[%s476_s4 + $0x8] sm:$0xff]  ;;  %v325_v3 = vld [vmem:[%s476_s4] sm:$0xff]  ;;  %70 = vmatpush.bf16.msra.mxu0 %v324_v0  ;;  %s356_s4 = smov 64  }
   0x3   :  { %v418_v4 = vld [vmem:[%s477_s0] sm:$0xff]  ;;  %107 = vmatpush.bf16.msra.mxu1 %v326_v1  ;;  %v423_v5 = vld [vmem:[%s477_s0 + $0x8] sm:$0xff] }
   0x4   :  { %v332_v6 = vld [vmem:[%s478_s7] ss:$0 sm:$0xff]  ;;  %257 = vrot.lane.b32.xlu2 %v423_v5, %s355_s2  ;;  %v32_v8 = vpack.c.bf16 %v423_v5, %v418_v4  ;;  %v328_v17 = vld [vmem:[%s482_s6 + $0x8] sm:$0xff] }
   0x5   :  { %244 = vrot.lane.b32.xlu1 %v332_v6, %s356_s4  ;;  %v322_v7 = vld [vmem:[%s479_s1] sm:$0xff]  ;;  %223 = vmatpush.bf16.msra.mxu2 %v328_v17 }
   0x6   :  { %71 = vmatpush.bf16.msra.mxu0 %v323_v2  ;;  %v333_v9 = vld [vmem:[%s480_s3] ss:$0 sm:$0xff] }
   0x7   :  { %108 = vmatpush.bf16.msra.mxu1 %v325_v3  ;;  %v334_v10 = vld [vmem:[%s481_s5] ss:$0 sm:$0xff]  ;;  %s357_s5 = smov 96  }
   0x8   :  { %v327_v21 = vld [vmem:[%s482_s6] sm:$0xff] }
   0x9   :  { %301 = vmatmul.msk.bf16.vlgmr.msra.gmra.mxu0 %vm60_vm0, %v322_v7  ;;  %224 = vmatpush.bf16.msra.mxu2 %v327_v21 }
   0xa   :  { %310 = vmatmul.msk.bf16.vlgmr.msra.gmra.mxu1 %vm60_vm0, %v32_v8 }
   0xd   :  { %255 = vrot.lane.b32.xlu1 %v418_v4, %s355_s2 }
  0x77   :  { %v245_v58 = vpop.permute.xlu1 %244 }
  0x86   :  { %v73_v11 = vpop.f32.mrf.mxu0 }
  0x87   :  { %v110_v12 = vpop.f32.mrf.mxu1  ;;  %v74_v13 = vadd.f32 %v333_v9, %v73_v11 }
  0x88   :  { %v111_v14 = vadd.f32 %v334_v10, %v110_v12 }
  0x8a   :  { %v444_v15 = vadd.f32 %v111_v14, %v74_v13 }
  0x8c   :  { %v117_v16 = vsub.f32 0.0, %v444_v15  ;;  %v311_v1 = vadd.f32 -0.1, %v444_v15 }
  0x8e   :  { %v119_v18 = vmul.f32 1.442695, %v117_v16  ;;  %v75_v19 = vpop.f32.mrf.mxu0  ;;  %v157_v2 = vsub.f32 0.0, %v311_v1 }
  0x8f   :  { %v112_v20 = vpop.f32.mrf.mxu1  ;;  %v76_v22 = vadd.f32 %v333_v9, %v75_v19  ;;  %v258_v19 = vpop.permute.xlu2 %257 }
  0x90   :  { %335 = vpow2.f32 %v119_v18  ;;  %v113_v23 = vadd.f32 %v334_v10, %v112_v20  ;;  %v159_v3 = vmul.f32 1.442695, %v157_v2 }
  0x92   :  { %v453_v24 = vadd.f32 %v113_v23, %v76_v22  ;;  %v256_v23 = vpop.permute.xlu1 %255 }
  0x94   :  { %v118_v25 = vsub.f32 0.0, %v453_v24  ;;  %v312_v7 = vadd.f32 -0.1, %v453_v24 }
  0x96   :  { %v336_v26 = vpop.eup %335  ;;  %v121_v27 = vmul.f32 1.442695, %v118_v25  ;;  %v158_v9 = vsub.f32 0.0, %v312_v7 }
  0x97   :  { %v123_v28 = vadd.f32 1.0, %v336_v26 }
  0x98   :  { %337 = vpow2.f32 %v121_v27  ;;  %v161_v11 = vmul.f32 1.442695, %v158_v9 }
  0x99   :  { %339 = vrcp.f32 %v123_v28  ;;  %v136_v38 = vand.u32 2147483648, %v123_v28  ;;  %vm130_vm2 = vweird.f32 %v123_v28  ;;  %v134_v39 = vand.u32 2147483647, %v123_v28 }
  0x9b   :  { %v137_v45 = vor.u32 1.1754944e-38, %v136_v38  ;;  %vm135_vm5 = vcmp.eq.f32.partialorder %v134_v39, 8.507059e+37 }
  0x9e   :  { %v338_v29 = vpop.eup %337 }
  0x9f   :  { %v340_v30 = vpop.eup %339  ;;  %v124_v31 = vadd.f32 1.0, %v338_v29 }
  0xa0   :  { %v126_v32 = vmul.f32 %v340_v30, %v123_v28  ;;  %vm131_vm1 = vweird.f32 %v340_v30 }
  0xa1   :  { %341 = vrcp.f32 %v124_v31  ;;  %vm132_vm3 = vmor %vm130_vm2, %vm131_vm1  ;;  %v151_v41 = vand.u32 2147483648, %v124_v31  ;;  %v149_v44 = vand.u32 2147483647, %v124_v31  ;;  %vm145_vm6 = vweird.f32 %v124_v31 }
  0xa2   :  { %v127_v33 = vsub.f32 1.0, %v126_v32 }
  0xa3   :  { %v152_v48 = vor.u32 1.1754944e-38, %v151_v41  ;;  %vm150_vm8 = vcmp.eq.f32.partialorder %v149_v44, 8.507059e+37 }
  0xa4   :  { %v128_v34 = vmul.f32 %v340_v30, %v127_v33 }
  0xa6   :  { %v129_v36 = vadd.f32 %v340_v30, %v128_v34 }
  0xa7   :  { %v342_v35 = vpop.eup %341 }
  0xa8   :  { %v141_v37 = vmul.f32 %v342_v35, %v124_v31  ;;  %v133_v42 = vsel %vm132_vm3, %v340_v30, %v129_v36  ;;  %vm146_vm4 = vweird.f32 %v342_v35 }
  0xa9   :  { %v138_v47 = vsel %vm135_vm5, %v137_v45, %v133_v42  ;;  %vm147_vm7 = vmor %vm145_vm6, %vm146_vm4 }
  0xaa   :  { %v142_v40 = vsub.f32 1.0, %v141_v37  ;;  %v195_v51 = vmul.f32 %v138_v47, %v418_v4 }
  0xac   :  { %v143_v43 = vmul.f32 %v342_v35, %v142_v40 }
  0xae   :  { %v144_v46 = vadd.f32 %v342_v35, %v143_v43 }
  0xb0   :  { %v148_v49 = vsel %vm147_vm7, %v342_v35, %v144_v46 }
  0xb1   :  { %v153_v50 = vsel %vm150_vm8, %v152_v48, %v148_v49 }
  0xb2   :  { %v196_v52 = vmul.f32 %v153_v50, %v423_v5 }
  0xb4   :  { %v197_v53 = vpack.c.bf16 %v196_v52, %v195_v51 }
  0xb6   :  { %321 = vmatmul.msk.bf16.vlgmr.msra.gmra.mxu2 %vm60_vm0, %v197_v53 }
 0x139   :  { %v226_v54 = vpop.f32.mrf.mxu2 }
 0x13a   :  { %233 = vrot.lane.b32.xlu0 %v226_v54, %s356_s4 }
 0x141   :  { %v228_v55 = vpop.f32.mrf.mxu2 }
 0x142   :  { %235 = vrot.lane.b32.xlu0 %v228_v55, %s356_s4 }
 0x1ac   :  { %v234_v56 = vpop.permute.xlu0 %233 }
 0x1ad   :  { %v239_v57 = vadd.f32 %v234_v56, %v74_v13 }
 0x1af   :  { %v247_v59 = vadd.f32 %v245_v58, %v239_v57 }
 0x1b1   :  { %343 = vtanh.f32 %v247_v59 }
 0x1b4   :  { %v236_v60 = vpop.permute.xlu0 %235 }
 0x1b5   :  { %v240_v61 = vadd.f32 %v236_v60, %v76_v22 }
 0x1b7   :  { %v344_v62 = vpop.eup %343  ;;  %v248_v63 = vadd.f32 %v245_v58, %v240_v61 }
 0x1b8   :  { %265 = vrot.lane.b32.xlu2 %v344_v62, %s357_s5 }
 0x1b9   :  { %345 = vtanh.f32 %v248_v63 }
 0x1ba   :  { %347 = vpow2.f32 %v159_v3 }
 0x1bf   :  { %v346_v0 = vpop.eup %345 }
 0x1c0   :  { %267 = vrot.lane.b32.xlu0 %v346_v0, %s357_s5  ;;  %v348_v4 = vpop.eup %347 }
 0x1c1   :  { %v163_v5 = vadd.f32 1.0, %v348_v4 }
 0x1c3   :  { %349 = vrcp.f32 %v163_v5  ;;  %v176_v14 = vand.u32 2147483648, %v163_v5  ;;  %vm170_vm10 = vweird.f32 %v163_v5  ;;  %v174_v15 = vand.u32 2147483647, %v163_v5 }
 0x1c4   :  { %351 = vpow2.f32 %v161_v11 }
 0x1c5   :  { %v177_v18 = vor.u32 1.1754944e-38, %v176_v14  ;;  %vm175_vm12 = vcmp.eq.f32.partialorder %v174_v15, 8.507059e+37 }
 0x1c9   :  { %v350_v6 = vpop.eup %349 }
 0x1ca   :  { %v166_v8 = vmul.f32 %v350_v6, %v163_v5  ;;  %vm171_vm9 = vweird.f32 %v350_v6  ;;  %v352_v16 = vpop.eup %351 }
 0x1cb   :  { %vm172_vm11 = vmor %vm170_vm10, %vm171_vm9  ;;  %v164_v20 = vadd.f32 1.0, %v352_v16 }
 0x1cc   :  { %v167_v10 = vsub.f32 1.0, %v166_v8 }
 0x1cd   :  { %353 = vrcp.f32 %v164_v20  ;;  %v191_v33 = vand.u32 2147483648, %v164_v20  ;;  %vm185_vm14 = vweird.f32 %v164_v20  ;;  %v189_v34 = vand.u32 2147483647, %v164_v20 }
 0x1ce   :  { %v168_v12 = vmul.f32 %v350_v6, %v167_v10 }
 0x1cf   :  { %v192_v36 = vor.u32 1.1754944e-38, %v191_v33  ;;  %vm190_vm1 = vcmp.eq.f32.partialorder %v189_v34, 8.507059e+37 }
 0x1d0   :  { %v169_v13 = vadd.f32 %v350_v6, %v168_v12 }
 0x1d2   :  { %v173_v17 = vsel %vm172_vm11, %v350_v6, %v169_v13 }
 0x1d3   :  { %v178_v21 = vsel %vm175_vm12, %v177_v18, %v173_v17  ;;  %v354_v28 = vpop.eup %353 }
 0x1d4   :  { %v251_v22 = vsub.f32 1.0, %v178_v21  ;;  %v181_v29 = vmul.f32 %v354_v28, %v164_v20  ;;  %vm186_vm13 = vweird.f32 %v354_v28 }
 0x1d5   :  { %vm187_vm15 = vmor %vm185_vm14, %vm186_vm13 }
 0x1d6   :  { %v261_v25 = vmul.f32 %v256_v23, %v251_v22  ;;  %v182_v30 = vsub.f32 1.0, %v181_v29 }
 0x1d8   :  { %v183_v31 = vmul.f32 %v354_v28, %v182_v30 }
 0x1da   :  { %v184_v32 = vadd.f32 %v354_v28, %v183_v31 }
 0x1dc   :  { %v188_v35 = vsel %vm187_vm15, %v354_v28, %v184_v32 }
 0x1dd   :  { %v193_v37 = vsel %vm190_vm1, %v192_v36, %v188_v35 }
 0x1de   :  { %v252_v38 = vsub.f32 1.0, %v193_v37 }
 0x1e0   :  { %v262_v40 = vmul.f32 %v258_v19, %v252_v38 }
 0x212   :  { %v266_v24 = vpop.permute.xlu2 %265 }
 0x213   :  { %v271_v26 = vmul.f32 %v266_v24, %v178_v21 }
 0x215   :  { %v273_v27 = vadd.f32 %v271_v26, %v261_v25 }
 0x217   :  { %277 = vrot.lane.b32.xlu1 %v273_v27, %s357_s5 }
 0x232   :  { %v268_v39 = vpop.permute.xlu0 %267 }
 0x233   :  { %v272_v41 = vmul.f32 %v268_v39, %v193_v37 }
 0x235   :  { %v274_v42 = vadd.f32 %v272_v41, %v262_v40 }
 0x237   :  { %279 = vrot.lane.b32.xlu2 %v274_v42, %s357_s5 }
 0x289   :  { %v278_v43 = vpop.permute.xlu1 %277 }
 0x28a   :  { %283 = vst.msk [vmem:[%s483_s8] sm:$0xff] %vm60_vm0, %v278_v43 }
 0x291   :  { %v280_v44 = vpop.permute.xlu2 %279 }
 0x292   :  { %284 = vst.msk [vmem:[%s483_s8 + $0x8] sm:$0xff] %vm60_vm0, %v280_v44 }

// kernel: stable_transformer_xl_forward.17
= control target key start
LH: loop header
LB: loop body
LE: loop exit
PB: predicated region body
PF: predicated region fallthrough
CT: control target
= control target key end

     0   :  { %s1163_s30 = smov 0   ;;  %s1165_s10 = smov 0   ;;  %s1297_s0 = inlined_call_operand.vmem [shape: bf16[2,4,8,8], index: 0, kind: input, shape index: {}]   ;;  %s1298_s1 = inlined_call_operand.vmem [shape: bf16[2,4,8,8], index: 1, kind: input, shape index: {}]   ;;  %s1299_s2 = inlined_call_operand.vmem [shape: bf16[2,4,8,8], index: 2, kind: input, shape index: {}]   ;;  %s1300_s3 = inlined_call_operand.vmem [shape: bf16[2,4,8,8], index: 3, kind: input, shape index: {}]   ;;  %s1301_s4 = inlined_call_operand.vmem [shape: bf16[2,4,8,8], index: 4, kind: input, shape index: {}]   ;;  %s1302_s5 = inlined_call_operand.vmem [shape: bf16[4,128,8], index: 5, kind: input, shape index: {}]   ;;  %s1303_s6 = inlined_call_operand.vmem [shape: f32[4,1,8], index: 6, kind: input, shape index: {}]   ;;  %s1304_s7 = inlined_call_operand.vmem [shape: f32[4,1,8], index: 7, kind: input, shape index: {}]   ;;  %s1305_s8 = inlined_call_operand.vmem [shape: bf16[4,8,32], index: 8, kind: input, shape index: {}]   ;;  %s1306_s9 = inlined_call_operand.vmem [shape: bf16[2,8,32], index: 9, kind: output, shape index: {}]  }
   0x1   :  { %1307 = sst [smem:[#allocation3_spill]] %s1302_s5  ;;  %s1167_s11 = smov 0  }
   0x2   :  { %s1169_s12 = smov 0   ;;  %s1171_s13 = smov 0  }
   0x3 LB: > { %s28_s14 = sadd.s32 1, %s1101_s11  ;;  %s31_s15 = sadd.s32 1, %s1105_s12  ;;  %s1109_s13 = sphi %s1171_s13, %s19_s13   ;;  %s1105_s12 = sphi %s1169_s12, %s1313_s12   ;;  %s1101_s11 = sphi %s1167_s11, %s1312_s11   ;;  %s1097_s10 = sphi %s1165_s10, %s1311_s10   ;;  %s1093_s30 = sphi %s1163_s30, %s1310_s30  }
   0x4   : > { %p29_p0 = scmp.ge.s32.totalorder %s28_s14, 4  ;;  %p959_p1 = scmp.ge.s32.totalorder %s1109_s13, 1 }
   0x5   : > { %p399_p2 = scmp.lt.s32.totalorder %s1109_s13, 9 }
   0x6   : > { %s1315_s14 = smov (%p29_p0, %s28_s14), 0  ;;  %s1317_s15 = smov (!%p29_p0, %s31_s15), %s1105_s12 }
   0x7   : > { %p400_p3 = pnand %p959_p1, %p399_p2  ;;  %p33_p4 = scmp.ge.s32.totalorder %s1317_s15, 2 }
   0x8   : > { %p486_p5 = scmp.lt.s32.totalorder (!%p400_p3), %s1093_s30, 3  ;;  %p484_p6 = scmp.lt.s32.totalorder (!%p400_p3), %s1097_s10, 1 }
   0x9   : > { %s1319_s15 = smov (%p33_p4, %s1317_s15), 0  ;;  %403 = sbr.rel (%p400_p3) target bundleno = 877 (0x36d), region = 56 }
   0xa   : > { %s1308_s5 = sld [smem:[#allocation3_spill]] (!%p400_p3)  ;;  %p1009_p7 = scmp.ne.s32.totalorder (!%p400_p3), %s1093_s30, 0 }
   0xe   : > { %s1197_s16 = scalar_select %p486_p5, %s1093_s30, 3  ;;  %vm632_vm0 = vcmask 64512   ;;  %vm551_vm1 = vcmask 1043456   ;;  %v696_v34 = vlaneseq  ;;  %vm703_vm3 = vcmask 130048  }
   0xf   : > { %s1321_s10 = smov (!%p484_p6, %s1097_s10), 1 }
  0x10   : > { %s1014_s17 = sshll.u32 %s1197_s16, 6  ;;  %s972_s18 = sshll.u32 %s1197_s16, 2  ;;  %v697_v35 = vshrl.u32 %v696_v34, 7  ;;  %v699_v36 = vand.u32 127, %v696_v34 }
  0x11   : > { %s1204_s21 = scalar_lea.vmem %s1308_s5, %s1014_s17  ;;  %s1209_s24 = scalar_lea.vmem %s1305_s8, %s972_s18 }
  0x12   : > { %v1022_v0 = vld [vmem:[%s1204_s21 + $0x38] sm:$0xff]  ;;  %s960_s25 = sshll.u32 %s1321_s10, 2  ;;  %s531_s18 = scalar_lea.vmem %s1303_s6, %s1197_s16  ;;  %v1021_v2 = vld [vmem:[%s1204_s21 + $0x30] sm:$0xff]  ;;  %v1020_v4 = vld [vmem:[%s1204_s21 + $0x28] sm:$0xff]  ;;  %v700_v37 = vadd.s32 8, %v697_v35 }
  0x13   : > { %s1219_s19 = scalar_lea.vmem %s1306_s9, %s960_s25  ;;  %v658_v1 = vsel %vm632_vm0, %v1022_v0, 0  ;;  %v655_v3 = vsel %vm632_vm0, %v1021_v2, 0  ;;  %v652_v5 = vsel %vm632_vm0, %v1020_v4, 0  ;;  %v1019_v6 = vld [vmem:[%s1204_s21 + $0x20] sm:$0xff]  ;;  %s489_s10 = sadd.s32 %s960_s25, %s1197_s16  ;;  %v1018_v8 = vld [vmem:[%s1204_s21 + $0x18] sm:$0xff]  ;;  %v1017_v13 = vld [vmem:[%s1204_s21 + $0x10] sm:$0xff] }
  0x14   : > { %660 = vmatpush.bf16.xpose.msra.mxu0 %v658_v1  ;;  %v649_v7 = vsel %vm632_vm0, %v1019_v6, 0  ;;  %s1234_s23 = sshll.u32 %s489_s10, 2  ;;  %v646_v9 = vsel %vm632_vm0, %v1018_v8, 0  ;;  %v1066_v15 = vld [vmem:[%s531_s18] ss:$0 sm:$0xff]  ;;  %v643_v19 = vsel %vm632_vm0, %v1017_v13, 0  ;;  %s1309_s18 = scalar_lea.vmem %s1304_s7, %s1197_s16  ;;  %vm701_vm2 = vcmp.gt.s32.totalorder %v699_v36, %v700_v37 }
  0x15   : > { %s499_s29 = scalar_lea.vmem %s1298_s1, %s1234_s23  ;;  %s491_s22 = scalar_lea.vmem %s1297_s0, %s1234_s23  ;;  %v1016_v22 = vld [vmem:[%s1204_s21 + $0x8] sm:$0xff]  ;;  %v1015_v25 = vld [vmem:[%s1204_s21] sm:$0xff] }
  0x16   : > { %s515_s25 = scalar_lea.vmem %s1300_s3, %s1234_s23  ;;  %v547_v10 = vld [vmem:[%s499_s29] sm:$0xf]  ;;  %v640_v24 = vsel %vm632_vm0, %v1016_v22, 0  ;;  %v637_v27 = vsel %vm632_vm0, %v1015_v25, 0  ;;  %s1111_s10 = smov 377  }
  0x17   : > { %v544_v11 = vld [vmem:[%s491_s22] sm:$0xf]  ;;  %v549_v12 = vunpack.c.l.b16 %v547_v10  ;;  %s507_s26 = scalar_lea.vmem %s1299_s2, %s1234_s23  ;;  %s523_s17 = scalar_lea.vmem %s1301_s4, %s1234_s23 }
  0x18   : > { %v546_v14 = vld [vmem:[%s515_s25] sm:$0xf]  ;;  %v545_v17 = vunpack.c.l.bf16 %v544_v11 }
  0x19   : > { %v550_v16 = vpack.c.b16 %v549_v12, %v549_v12  ;;  %v1065_v26 = vld [vmem:[%s1309_s18] ss:$0 sm:$0xff] }
  0x1a   : > { %v584_v21 = vadd.f32 %v1066_v15, %v545_v17  ;;  %v590_v28 = vadd.f32 %v1065_v26, %v545_v17  ;;  %v556_v48 = vld [vmem:[%s507_s26] sm:$0xf] }
  0x1b   : > { %v554_v18 = vsel %vm551_vm1, %v546_v14, %v550_v16  ;;  %v558_v49 = vunpack.c.l.b16 %v556_v48  ;;  %v555_v50 = vld [vmem:[%s523_s17] sm:$0xf] }
  0x1c   : > { %661 = vmatpush.bf16.xpose.msra.mxu0 %v655_v3  ;;  %v680_v20 = vsel %vm632_vm0, %v554_v18, 0  ;;  %v585_v23 = vpack.c.bf16 %v584_v21, %v584_v21  ;;  %v591_v29 = vpack.c.bf16 %v590_v28, %v590_v28 }
  0x1d   : > { %689 = vmatpush.bf16.xpose.msra.mxu1 %v680_v20  ;;  %v559_v51 = vpack.c.b16 %v558_v49, %v558_v49 }
  0x1f   : > { %v562_v52 = vsel %vm551_vm1, %v555_v50, %v559_v51 }
  0x20   : > { %726 = vmatpush.bf16.msra.mxu2 %v562_v52 }
  0x24   : > { %662 = vmatpush.bf16.xpose.msra.mxu0 %v652_v5  ;;  %1007 = vmatmul.msk.bf16.vlgmr.msra.gmra.mxu1 %vm632_vm0, %v585_v23 }
  0x2c   : > { %663 = vmatpush.bf16.xpose.msra.mxu0 %v649_v7 }
  0x34   : > { %664 = vmatpush.bf16.xpose.msra.mxu0 %v646_v9 }
  0x3c   : > { %665 = vmatpush.bf16.xpose.msra.mxu0 %v643_v19 }
  0x44   : > { %666 = vmatpush.bf16.xpose.msra.mxu0 %v640_v24 }
  0x4c   : > { %667 = vmatpush.bf16.xpose.msra.mxu0 %v637_v27 }
  0x53   : > { %1006 = vmatmul.msk.bf16.vlgmr.msra.gmra.mxu0 %vm632_vm0, %v591_v29 }
  0xa1   : > { %v691_v30 = vpop.f32.mrf.mxu1 }
  0xa9   : > { %v693_v31 = vpop.f32.mrf.mxu1 }
  0xd0   : > { %v669_v32 = vpop.f32.mrf.mxu0 }
  0xd1   : > { %675 = vrot.lane.b32.xlu0 %v669_v32, %s1111_s10 }
  0xd8   : > { %v671_v33 = vpop.f32.mrf.mxu0 }
 0x143   : > { %v676_v38 = vpop.permute.xlu0 %675 }
 0x144   : > { %v692_v39 = vadd.f32 %v691_v30, %v676_v38 }
 0x146   : > { %v695_v40 = vmul.f32 0.35355338, %v692_v39 }
 0x148   : > { %v702_v41 = vsel %vm701_vm2, -1e+30, %v695_v40 }
 0x149   : > { %v704_v42 = vsel %vm703_vm3, %v702_v41, -inf }
 0x14a   : > { %705 = vmax.xlane.f32.xlu0 %v704_v42 }
 0x1bd   : > { %v706_v43 = vpop.xlane.xlu0 %705 }
 0x1be   : > { %v707_v44 = vsub.f32 %v702_v41, %v706_v43 }
 0x1c0   : > { %v708_v45 = vmul.f32 1.442695, %v707_v44 }
 0x1c2   : > { %1067 = vpow2.f32 %v708_v45 }
 0x1c8   : > { %v1068_v46 = vpop.eup %1067 }
 0x1c9   : > { %v710_v47 = vsel %vm703_vm3, %v1068_v46, 0.0 }
 0x1ca   : > { %711 = vadd.xlane.f32.xlu1 %v710_v47 }
 0x23d   : > { %v712_v53 = vpop.xlane.xlu1 %711 }
 0x23e   : > { %1069 = vrcp.f32 %v712_v53 }
 0x244   : > { %v1070_v54 = vpop.eup %1069 }
 0x245   : > { %v714_v55 = vmul.f32 %v1070_v54, %v1068_v46 }
 0x247   : > { %v715_v56 = vpack.c.bf16 %v714_v55, %v714_v55 }
 0x249   : > { %1008 = vmatmul.msk.bf16.vlgmr.msra.gmra.mxu2 %vm703_vm3, %v715_v56 }
 0x2cc   : > { %v728_v57 = vpop.f32.mrf.mxu2 }
 0x2d0   : > { %735 = sbr.rel (%p1009_p7) target bundleno = 727 (0x2d7), region = 60 }
 0x2d4   : > { %v730_v58 = vpop.f32.mrf.mxu2 }
 0x2d5   : > { %vm736_vm4 = vcmask 261120   ;;  %v1112_v59 = vmov 0.0  }
 0x2d6   : > { %737 = vst.msk [vmem:[#allocation2] sm:$0xff] %vm736_vm4, %v1112_v59 }
 0x2d7 PF: > { %v740_v60 = vld [vmem:[%s1209_s24] sm:$0xf]  ;;  %v739_v62 = vpack.c.bf16 %v728_v57, %v728_v57  ;;  %vm761_vm5 = vcmask 261120   ;;  %p1011_p8 = scmp.ne.s32.totalorder %s1093_s30, 3 }
 0x2d8   : > { %v745_v61 = vsel %vm551_vm1, %v740_v60, 0 }
 0x2d9   : > { %754 = vmatpush.bf16.msra.mxu3 %v745_v61 }
 0x2dc   : > { %1010 = vmatmul.msk.bf16.vlgmr.msra.gmra.mxu3 %vm632_vm0, %v739_v62 }
 0x2dd   : > { %v738_v63 = vld [vmem:[#allocation2] sm:$0xff] }
 0x35f   : > { %v756_v0 = vpop.f32.mrf.mxu3 }
 0x360   : > { %v760_v1 = vadd.f32 %v756_v0, %v738_v63 }
 0x362   : > { %762 = vst.msk [vmem:[#allocation2] sm:$0xff] %vm761_vm5, %v760_v1 }
 0x363   : > { %766 = sbr.rel (%p1011_p8) target bundleno = 877 (0x36d), region = 64 }
 0x367   : > { %v758_v2 = vpop.f32.mrf.mxu3 }
 0x368   : > { %vm769_vm6 = vcmask 257024  }
 0x369   : > { %v767_v3 = vld [vmem:[#allocation2] sm:$0xff] }
 0x36a   : > { %v768_v4 = vpack.c.bf16 %v767_v3, %v767_v3 }
 0x36c   : > { %770 = vst.msk [vmem:[%s1219_s19] sm:$0xf] %vm769_vm6, %v768_v4 }
 0x36d PF: > { %s19_s13 = sadd.s32 1, %s1109_s13   ;;  %s1310_s30 = smov %s1101_s11 }
 0x36e   : > { %p16_p9 = scmp.ge.s32.totalorder %s19_s13, 10   ;;  %s1311_s10 = smov %s1105_s12 }
 0x36f   : > { %s1312_s11 = smov %s1315_s14  ;;  %s1313_s12 = smov %s1319_s15 }
 0x370   :  { %18 = sbr.rel (!%p16_p9) target bundleno = 3 (0x3), region = 118 }

</bundles_post_ra>
